<compile_context>
chip_gen: v7x
topology: tpu7x:2x2x1
jax: 0.10.0
libtpu: 0.0.40
codegen_flags: <defaults>
</compile_context>

<pallas_src>
import math
import functools

import numpy as np
import jax
import jax.numpy as jnp
from jax import lax
from jax.experimental import pallas as pl
from jax.experimental.pallas import tpu as pltpu


# ----------------------------------------------------------------------------
# Deterministic LBConv weight construction (host-side, numpy).
# Mimics: fill(0); pick floor(sparsity*numel) indices (with replacement);
# each selected entry = bernoulli(0.5)*2-1  in {-1, +1}.
# Shape: (C_out, C_in // groups, K, K)  -- grouped form, NOT expanded to dense.
# ----------------------------------------------------------------------------
def make_lbconv_weight(C_in, C_out, kernel_size, groups, sparsity, seed=0):
    rng = np.random.RandomState(seed)
    cg = C_in // groups
    num = C_out * cg * kernel_size * kernel_size
    w = np.zeros(num, dtype=np.float32)
    n_sel = math.floor(sparsity * num)
    idx = rng.randint(0, num, size=n_sel)
    signs = (rng.binomial(1, 0.5, size=n_sel).astype(np.float32) * 2.0) - 1.0
    for i, s in zip(idx, signs):
        w[i] = s
    return w.reshape(C_out, cg, kernel_size, kernel_size)


def build_taps_by_offset(w_grouped, groups):
    """Group the NONZERO taps of the grouped ternary weight by (kh, kw).

    Returns dict {(kh, kw): ((co, ci_global, sign), ...)} used at trace time."""
    w = np.asarray(w_grouped, dtype=np.float32)
    C_out, cg, K, _ = w.shape
    out_per_g = C_out // groups
    taps = {}
    for co in range(C_out):
        g = co // out_per_g
        for cig in range(cg):
            ci = g * cg + cig
            for kh in range(K):
                for kw in range(K):
                    s = float(w[co, cig, kh, kw])
                    if s != 0.0:
                        taps.setdefault((kh, kw), []).append((co, ci, s))
    return {k: tuple(v) for k, v in taps.items()}


# ----------------------------------------------------------------------------
# Pallas kernel: fused conv(+relu) / maxpool / avgpool for one batch block.
# ----------------------------------------------------------------------------
def _nonlearnable_kernel(x_ref, o_ref, *scratch, Nb, C, K, H, W,
                         stride, padding, taps_by_kk, acc_dtype):
    # x_ref    : (Nb, C, H, W)        raw (un-padded) input block        [VMEM]
    # o_ref    : (Nb, 3C, Ho*Wo)      lane-dense output block            [VMEM]
    # scratch0 : (Nb, C, Hp, Wp)      zero-bordered padded image         [VMEM]
    # scratch1 : (Nb, C, Hp, Wp)      -inf-bordered padded image (p > 0) [VMEM]
    Hp, Wp = H + 2 * padding, W + 2 * padding
    Ho = (Hp - K) // stride + 1
    Wo = (Wp - K) // stride + 1

    xpad_ref = scratch[0]
    xneg_ref = scratch[1] if padding > 0 else scratch[0]
    cdt = xpad_ref.dtype

    x = x_ref[...].astype(cdt)

    if padding > 0:
        p = padding
        # Interior written once per scratch; only the four thin border strips
        # are initialised (no redundant full zero-fill of the scratch).
        xpad_ref[:, :, p:p + H, p:p + W] = x
        xneg_ref[:, :, p:p + H, p:p + W] = x
        # top / bottom strips (full width)
        xpad_ref[:, :, 0:p, :] = jnp.zeros((Nb, C, p, Wp), cdt)
        xpad_ref[:, :, Hp - p:Hp, :] = jnp.zeros((Nb, C, p, Wp), cdt)
        xneg_ref[:, :, 0:p, :] = jnp.full((Nb, C, p, Wp), -jnp.inf, cdt)
        xneg_ref[:, :, Hp - p:Hp, :] = jnp.full((Nb, C, p, Wp), -jnp.inf, cdt)
        # left / right strips (interior rows only)
        xpad_ref[:, :, p:p + H, 0:p] = jnp.zeros((Nb, C, H, p), cdt)
        xpad_ref[:, :, p:p + H, Wp - p:Wp] = jnp.zeros((Nb, C, H, p), cdt)
        xneg_ref[:, :, p:p + H, 0:p] = jnp.full((Nb, C, H, p), -jnp.inf, cdt)
        xneg_ref[:, :, p:p + H, Wp - p:Wp] = jnp.full((Nb, C, H, p), -jnp.inf, cdt)
    else:
        xpad_ref[...] = x

    def window(ref, kh, kw):
        # Shifted (and possibly strided) window of the padded image.
        if stride == 1:
            return ref[:, :, kh:kh + Ho, kw:kw + Wo]
        return ref[:, :, pl.ds(kh, Ho, stride), pl.ds(kw, Wo, stride)]

    # ---- Pass A: maxpool over the -inf-bordered image (no per-offset masks).
    mx = None
    for kh in range(K):
        for kw in range(K):
            w_mx = window(xneg_ref, kh, kw)
            mx = w_mx if mx is None else jnp.maximum(mx, w_mx)
    # Store immediately so mx's registers die before the conv pass.
    o_ref[:, C:2 * C, :] = mx.reshape(Nb, C, Ho * Wo).astype(o_ref.dtype)

    # ---- Pass B: avgpool sum + ternary conv share one window load per offset.
    sm = None
    acc = [None] * C
    for kh in range(K):
        for kw in range(K):
            w_sl = window(xpad_ref, kh, kw).astype(acc_dtype)  # (Nb, C, Ho, Wo)
            sm = w_sl if sm is None else sm + w_sl
            # Ternary conv: static taps baked at trace time, zero taps skipped.
            for (co, ci, s) in taps_by_kk.get((kh, kw), ()):
                term = w_sl[:, ci]                             # (Nb, Ho, Wo)
                if s == 1.0:
                    acc[co] = term if acc[co] is None else acc[co] + term
                elif s == -1.0:
                    acc[co] = -term if acc[co] is None else acc[co] - term
                else:  # robustness for non-ternary weights (not hit here)
                    t = s * term
                    acc[co] = t if acc[co] is None else acc[co] + t

    inv_kk = jnp.asarray(1.0 / (K * K), acc_dtype)
    o_ref[:, 2 * C:3 * C, :] = (sm * inv_kk).reshape(Nb, C, Ho * Wo) \
        .astype(o_ref.dtype)

    zeros = jnp.zeros((Nb, Ho, Wo), acc_dtype)
    conv = jnp.maximum(
        jnp.stack([a if a is not None else zeros for a in acc], axis=1), 0.0)
    o_ref[:, 0:C, :] = conv.reshape(Nb, C, Ho * Wo).astype(o_ref.dtype)


# ----------------------------------------------------------------------------
# Wrapper
# ----------------------------------------------------------------------------
def _pick_batch_block(N):
    """Largest divisor of N that keeps >= 2 grid steps (feed both v7x cores);
    falls back to 1 for N < 2."""
    if N < 2:
        return 1
    best = 1
    for d in range(1, N + 1):
        if N % d == 0 and N // d >= 2:
            best = d
    return best


def non_learnable_layer(x, w_grouped, *, kernel_size, stride, padding, groups,
                        batch_block=None):
    N, C, H, W = x.shape
    K = kernel_size
    Ho = (H + 2 * padding - K) // stride + 1
    Wo = (W + 2 * padding - K) // stride + 1
    Hp, Wp = H + 2 * padding, W + 2 * padding

    if batch_block is None:
        batch_block = _pick_batch_block(N)
    Nb = batch_block
    assert N % Nb == 0, (N, Nb)

    taps_by_kk = build_taps_by_offset(w_grouped, groups)

    kernel = functools.partial(
        _nonlearnable_kernel,
        Nb=Nb, C=C, K=K, H=H, W=W, stride=stride, padding=padding,
        taps_by_kk=taps_by_kk, acc_dtype=jnp.float32)

    # Compute/scratch dtype follows the input dtype (bf16-friendly on v6e/v7x).
    scratch_shapes = [pltpu.VMEM((Nb, C, Hp, Wp), x.dtype)]
    if padding > 0:
        scratch_shapes.append(pltpu.VMEM((Nb, C, Hp, Wp), x.dtype))

    out_flat = pl.pallas_call(
        kernel,
        # Lane-dense output: last dim Ho*Wo (>=128 at default shapes) -> plain
        # vst instead of masked vst.msk; reshaped back below for free.
        out_shape=jax.ShapeDtypeStruct((N, 3 * C, Ho * Wo), x.dtype),
        grid=(N // Nb,),
        in_specs=[pl.BlockSpec((Nb, C, H, W), lambda n: (n, 0, 0, 0))],
        out_specs=pl.BlockSpec((Nb, 3 * C, Ho * Wo), lambda n: (n, 0, 0)),
        scratch_shapes=scratch_shapes,
        compiler_params=pltpu.CompilerParams(dimension_semantics=("parallel",)),
    )(x)
    return out_flat.reshape(N, 3 * C, Ho, Wo)


# ----------------------------------------------------------------------------
# Pure-JAX reference (correctness check only)
# ----------------------------------------------------------------------------
def reference(x, w_grouped, *, kernel_size, stride, padding, groups):
    K = kernel_size
    spatial_pad = [(0, 0), (0, 0), (padding, padding), (padding, padding)]
    conv = lax.conv_general_dilated(
        x, jnp.asarray(w_grouped, jnp.float32),
        window_strides=(stride, stride),
        padding=[(padding, padding), (padding, padding)],
        dimension_numbers=("NCHW", "OIHW", "NCHW"),
        feature_group_count=groups)
    x1 = jnp.maximum(conv, 0.0)
    x2 = lax.reduce_window(x, -jnp.inf, lax.max,
                           (1, 1, K, K), (1, 1, stride, stride), spatial_pad)
    x3 = lax.reduce_window(x, 0.0, lax.add,
                           (1, 1, K, K), (1, 1, stride, stride), spatial_pad) / (K * K)
    return jnp.concatenate([x1, x2, x3], axis=1)


if __name__ == "__main__":
    configs = [
        # module defaults: C_in=4, k=3, stride=1, pad=1, groups=1
        dict(N=2, C=4, H=16, W=16, K=3, stride=1, padding=1, groups=1,
             sparsity=0.5, seed=0),
        # grouped-conv path (no dense expansion of the grouped weight)
        dict(N=2, C=8, H=16, W=16, K=3, stride=1, padding=1, groups=2,
             sparsity=0.5, seed=1),
        # batch folding path (Nb=2, grid=(2,))
        dict(N=4, C=4, H=16, W=16, K=3, stride=1, padding=1, groups=1,
             sparsity=0.5, seed=2),
        # padding=0 path (single scratch, no -inf border needed)
        dict(N=2, C=4, H=12, W=12, K=3, stride=1, padding=0, groups=1,
             sparsity=0.5, seed=3),
    ]

    key = jax.random.PRNGKey(0)
    for cfg in configs:
        key, sub = jax.random.split(key)
        x = jax.random.normal(sub, (cfg["N"], cfg["C"], cfg["H"], cfg["W"]),
                              dtype=jnp.float32)
        w = make_lbconv_weight(cfg["C"], cfg["C"], cfg["K"], cfg["groups"],
                               cfg["sparsity"], seed=cfg["seed"])

        out = non_learnable_layer(
            x, w, kernel_size=cfg["K"], stride=cfg["stride"],
            padding=cfg["padding"], groups=cfg["groups"])
        out = jax.block_until_ready(out)

        ref = jax.block_until_ready(
            reference(x, w, kernel_size=cfg["K"], stride=cfg["stride"],
                      padding=cfg["padding"], groups=cfg["groups"]))

        assert out.shape == ref.shape, (out.shape, ref.shape)
        np.testing.assert_allclose(np.asarray(out), np.asarray(ref),
                                   rtol=1e-5, atol=1e-5)

    print("KERNEL_OK")
</pallas_src>

<mosaic_0001>
module attributes {stable_mosaic.version = 11 : i64} {
  func.func @_nonlearnable_kernel(%arg0: i32, %arg1: memref<1x4x16x16xf32, #tpu.memory_space<vmem>>, %arg2: memref<1x12x256xf32, #tpu.memory_space<vmem>>, %arg3: memref<1x4x18x18xf32, #tpu.memory_space<vmem>>, %arg4: memref<1x4x18x18xf32, #tpu.memory_space<vmem>>) attributes {dimension_semantics = [#tpu.dimension_semantics<parallel>], iteration_bounds = array<i64: 2>, scalar_prefetch = 0 : i64, scratch_operands = 2 : i64, tpu.core_type = #tpu.core_type<tc>, window_params = [{transform_indices = @transform_0, window_bounds = array<i64: 1, 4, 16, 16>}, {transform_indices = @transform_1, window_bounds = array<i64: 1, 12, 256>}]} {
    %c0 = arith.constant 0 : index
    %c0_0 = arith.constant 0 : index
    %c0_1 = arith.constant 0 : index
    %c0_2 = arith.constant 0 : index
    %0 = vector.load %arg1[%c0, %c0_0, %c0_1, %c0_2] : memref<1x4x16x16xf32, #tpu.memory_space<vmem>>, vector<1x4x16x16xf32>
    %c0_3 = arith.constant 0 : index
    %c0_4 = arith.constant 0 : index
    %c1 = arith.constant 1 : index
    %c1_5 = arith.constant 1 : index
    %1 = vector.load %arg3[%c0_3, %c0_4, %c1, %c1_5] : memref<1x4x18x18xf32, #tpu.memory_space<vmem>>, vector<1x4x16x16xf32>
    tpu.vector_store %arg3[%c0_3, %c0_4, %c1, %c1_5], %0 {strides = array<i32>} : memref<1x4x18x18xf32, #tpu.memory_space<vmem>>, vector<1x4x16x16xf32>,
    %c0_6 = arith.constant 0 : index
    %c0_7 = arith.constant 0 : index
    %c1_8 = arith.constant 1 : index
    %c1_9 = arith.constant 1 : index
    %2 = vector.load %arg4[%c0_6, %c0_7, %c1_8, %c1_9] : memref<1x4x18x18xf32, #tpu.memory_space<vmem>>, vector<1x4x16x16xf32>
    tpu.vector_store %arg4[%c0_6, %c0_7, %c1_8, %c1_9], %0 {strides = array<i32>} : memref<1x4x18x18xf32, #tpu.memory_space<vmem>>, vector<1x4x16x16xf32>,
    %cst = arith.constant 0.000000e+00 : f32
    %3 = vector.broadcast %cst : f32 to vector<1x4x1x18xf32>
    %c0_10 = arith.constant 0 : index
    %c0_11 = arith.constant 0 : index
    %c0_12 = arith.constant 0 : index
    %c0_13 = arith.constant 0 : index
    %4 = vector.load %arg3[%c0_10, %c0_11, %c0_12, %c0_13] : memref<1x4x18x18xf32, #tpu.memory_space<vmem>>, vector<1x4x1x18xf32>
    tpu.vector_store %arg3[%c0_10, %c0_11, %c0_12, %c0_13], %3 {strides = array<i32>} : memref<1x4x18x18xf32, #tpu.memory_space<vmem>>, vector<1x4x1x18xf32>,
    %cst_14 = arith.constant 0.000000e+00 : f32
    %5 = vector.broadcast %cst_14 : f32 to vector<1x4x1x18xf32>
    %c0_15 = arith.constant 0 : index
    %c0_16 = arith.constant 0 : index
    %c17 = arith.constant 17 : index
    %c0_17 = arith.constant 0 : index
    %6 = vector.load %arg3[%c0_15, %c0_16, %c17, %c0_17] : memref<1x4x18x18xf32, #tpu.memory_space<vmem>>, vector<1x4x1x18xf32>
    tpu.vector_store %arg3[%c0_15, %c0_16, %c17, %c0_17], %5 {strides = array<i32>} : memref<1x4x18x18xf32, #tpu.memory_space<vmem>>, vector<1x4x1x18xf32>,
    %cst_18 = arith.constant 0xFF800000 : f32
    %7 = vector.broadcast %cst_18 : f32 to vector<1x4x1x18xf32>
    %c0_19 = arith.constant 0 : index
    %c0_20 = arith.constant 0 : index
    %c0_21 = arith.constant 0 : index
    %c0_22 = arith.constant 0 : index
    %8 = vector.load %arg4[%c0_19, %c0_20, %c0_21, %c0_22] : memref<1x4x18x18xf32, #tpu.memory_space<vmem>>, vector<1x4x1x18xf32>
    tpu.vector_store %arg4[%c0_19, %c0_20, %c0_21, %c0_22], %7 {strides = array<i32>} : memref<1x4x18x18xf32, #tpu.memory_space<vmem>>, vector<1x4x1x18xf32>,
    %cst_23 = arith.constant 0xFF800000 : f32
    %9 = vector.broadcast %cst_23 : f32 to vector<1x4x1x18xf32>
    %c0_24 = arith.constant 0 : index
    %c0_25 = arith.constant 0 : index
    %c17_26 = arith.constant 17 : index
    %c0_27 = arith.constant 0 : index
    %10 = vector.load %arg4[%c0_24, %c0_25, %c17_26, %c0_27] : memref<1x4x18x18xf32, #tpu.memory_space<vmem>>, vector<1x4x1x18xf32>
    tpu.vector_store %arg4[%c0_24, %c0_25, %c17_26, %c0_27], %9 {strides = array<i32>} : memref<1x4x18x18xf32, #tpu.memory_space<vmem>>, vector<1x4x1x18xf32>,
    %cst_28 = arith.constant 0.000000e+00 : f32
    %11 = vector.broadcast %cst_28 : f32 to vector<1x4x16x1xf32>
    %c0_29 = arith.constant 0 : index
    %c0_30 = arith.constant 0 : index
    %c1_31 = arith.constant 1 : index
    %c0_32 = arith.constant 0 : index
    %12 = vector.load %arg3[%c0_29, %c0_30, %c1_31, %c0_32] : memref<1x4x18x18xf32, #tpu.memory_space<vmem>>, vector<1x4x16x1xf32>
    tpu.vector_store %arg3[%c0_29, %c0_30, %c1_31, %c0_32], %11 {strides = array<i32>} : memref<1x4x18x18xf32, #tpu.memory_space<vmem>>, vector<1x4x16x1xf32>,
    %cst_33 = arith.constant 0.000000e+00 : f32
    %13 = vector.broadcast %cst_33 : f32 to vector<1x4x16x1xf32>
    %c0_34 = arith.constant 0 : index
    %c0_35 = arith.constant 0 : index
    %c1_36 = arith.constant 1 : index
    %c17_37 = arith.constant 17 : index
    %14 = vector.load %arg3[%c0_34, %c0_35, %c1_36, %c17_37] : memref<1x4x18x18xf32, #tpu.memory_space<vmem>>, vector<1x4x16x1xf32>
    tpu.vector_store %arg3[%c0_34, %c0_35, %c1_36, %c17_37], %13 {strides = array<i32>} : memref<1x4x18x18xf32, #tpu.memory_space<vmem>>, vector<1x4x16x1xf32>,
    %cst_38 = arith.constant 0xFF800000 : f32
    %15 = vector.broadcast %cst_38 : f32 to vector<1x4x16x1xf32>
    %c0_39 = arith.constant 0 : index
    %c0_40 = arith.constant 0 : index
    %c1_41 = arith.constant 1 : index
    %c0_42 = arith.constant 0 : index
    %16 = vector.load %arg4[%c0_39, %c0_40, %c1_41, %c0_42] : memref<1x4x18x18xf32, #tpu.memory_space<vmem>>, vector<1x4x16x1xf32>
    tpu.vector_store %arg4[%c0_39, %c0_40, %c1_41, %c0_42], %15 {strides = array<i32>} : memref<1x4x18x18xf32, #tpu.memory_space<vmem>>, vector<1x4x16x1xf32>,
    %cst_43 = arith.constant 0xFF800000 : f32
    %17 = vector.broadcast %cst_43 : f32 to vector<1x4x16x1xf32>
    %c0_44 = arith.constant 0 : index
    %c0_45 = arith.constant 0 : index
    %c1_46 = arith.constant 1 : index
    %c17_47 = arith.constant 17 : index
    %18 = vector.load %arg4[%c0_44, %c0_45, %c1_46, %c17_47] : memref<1x4x18x18xf32, #tpu.memory_space<vmem>>, vector<1x4x16x1xf32>
    tpu.vector_store %arg4[%c0_44, %c0_45, %c1_46, %c17_47], %17 {strides = array<i32>} : memref<1x4x18x18xf32, #tpu.memory_space<vmem>>, vector<1x4x16x1xf32>,
    %c0_48 = arith.constant 0 : index
    %c0_49 = arith.constant 0 : index
    %c0_50 = arith.constant 0 : index
    %c0_51 = arith.constant 0 : index
    %19 = vector.load %arg4[%c0_48, %c0_49, %c0_50, %c0_51] : memref<1x4x18x18xf32, #tpu.memory_space<vmem>>, vector<1x4x16x16xf32>
    %c0_52 = arith.constant 0 : index
    %c0_53 = arith.constant 0 : index
    %c0_54 = arith.constant 0 : index
    %c1_55 = arith.constant 1 : index
    %20 = vector.load %arg4[%c0_52, %c0_53, %c0_54, %c1_55] : memref<1x4x18x18xf32, #tpu.memory_space<vmem>>, vector<1x4x16x16xf32>
    %21 = arith.maximumf %19, %20 : vector<1x4x16x16xf32>
    %c0_56 = arith.constant 0 : index
    %c0_57 = arith.constant 0 : index
    %c0_58 = arith.constant 0 : index
    %c2 = arith.constant 2 : index
    %22 = vector.load %arg4[%c0_56, %c0_57, %c0_58, %c2] : memref<1x4x18x18xf32, #tpu.memory_space<vmem>>, vector<1x4x16x16xf32>
    %23 = arith.maximumf %21, %22 : vector<1x4x16x16xf32>
    %c0_59 = arith.constant 0 : index
    %c0_60 = arith.constant 0 : index
    %c1_61 = arith.constant 1 : index
    %c0_62 = arith.constant 0 : index
    %24 = vector.load %arg4[%c0_59, %c0_60, %c1_61, %c0_62] : memref<1x4x18x18xf32, #tpu.memory_space<vmem>>, vector<1x4x16x16xf32>
    %25 = arith.maximumf %23, %24 : vector<1x4x16x16xf32>
    %c0_63 = arith.constant 0 : index
    %c0_64 = arith.constant 0 : index
    %c1_65 = arith.constant 1 : index
    %c1_66 = arith.constant 1 : index
    %26 = vector.load %arg4[%c0_63, %c0_64, %c1_65, %c1_66] : memref<1x4x18x18xf32, #tpu.memory_space<vmem>>, vector<1x4x16x16xf32>
    %27 = arith.maximumf %25, %26 : vector<1x4x16x16xf32>
    %c0_67 = arith.constant 0 : index
    %c0_68 = arith.constant 0 : index
    %c1_69 = arith.constant 1 : index
    %c2_70 = arith.constant 2 : index
    %28 = vector.load %arg4[%c0_67, %c0_68, %c1_69, %c2_70] : memref<1x4x18x18xf32, #tpu.memory_space<vmem>>, vector<1x4x16x16xf32>
    %29 = arith.maximumf %27, %28 : vector<1x4x16x16xf32>
    %c0_71 = arith.constant 0 : index
    %c0_72 = arith.constant 0 : index
    %c2_73 = arith.constant 2 : index
    %c0_74 = arith.constant 0 : index
    %30 = vector.load %arg4[%c0_71, %c0_72, %c2_73, %c0_74] : memref<1x4x18x18xf32, #tpu.memory_space<vmem>>, vector<1x4x16x16xf32>
    %31 = arith.maximumf %29, %30 : vector<1x4x16x16xf32>
    %c0_75 = arith.constant 0 : index
    %c0_76 = arith.constant 0 : index
    %c2_77 = arith.constant 2 : index
    %c1_78 = arith.constant 1 : index
    %32 = vector.load %arg4[%c0_75, %c0_76, %c2_77, %c1_78] : memref<1x4x18x18xf32, #tpu.memory_space<vmem>>, vector<1x4x16x16xf32>
    %33 = arith.maximumf %31, %32 : vector<1x4x16x16xf32>
    %c0_79 = arith.constant 0 : index
    %c0_80 = arith.constant 0 : index
    %c2_81 = arith.constant 2 : index
    %c2_82 = arith.constant 2 : index
    %34 = vector.load %arg4[%c0_79, %c0_80, %c2_81, %c2_82] : memref<1x4x18x18xf32, #tpu.memory_space<vmem>>, vector<1x4x16x16xf32>
    %35 = arith.maximumf %33, %34 : vector<1x4x16x16xf32>
    %36 = vector.shape_cast %35 : vector<1x4x16x16xf32> to vector<1x4x256xf32>
    %c0_83 = arith.constant 0 : index
    %c4 = arith.constant 4 : index
    %c0_84 = arith.constant 0 : index
    %37 = vector.load %arg2[%c0_83, %c4, %c0_84] : memref<1x12x256xf32, #tpu.memory_space<vmem>>, vector<1x4x256xf32>
    tpu.vector_store %arg2[%c0_83, %c4, %c0_84], %36 {strides = array<i32>} : memref<1x12x256xf32, #tpu.memory_space<vmem>>, vector<1x4x256xf32>,
    %c0_85 = arith.constant 0 : index
    %c0_86 = arith.constant 0 : index
    %c0_87 = arith.constant 0 : index
    %c0_88 = arith.constant 0 : index
    %38 = vector.load %arg3[%c0_85, %c0_86, %c0_87, %c0_88] : memref<1x4x18x18xf32, #tpu.memory_space<vmem>>, vector<1x4x16x16xf32>
    %39 = vector.extract_strided_slice %38 {offsets = [0, 1, 0, 0], sizes = [1, 1, 16, 16], strides = [1, 1, 1, 1]} : vector<1x4x16x16xf32> to vector<1x1x16x16xf32>
    %40 = vector.shape_cast %39 : vector<1x1x16x16xf32> to vector<1x16x16xf32>
    %cst_89 = arith.constant 0.000000e+00 : f32
    %41 = vector.broadcast %cst_89 : f32 to vector<1x16x16xf32>
    %42 = arith.subf %41, %40 : vector<1x16x16xf32>
    %43 = vector.extract_strided_slice %38 {offsets = [0, 0, 0, 0], sizes = [1, 1, 16, 16], strides = [1, 1, 1, 1]} : vector<1x4x16x16xf32> to vector<1x1x16x16xf32>
    %44 = vector.shape_cast %43 : vector<1x1x16x16xf32> to vector<1x16x16xf32>
    %45 = vector.extract_strided_slice %38 {offsets = [0, 0, 0, 0], sizes = [1, 1, 16, 16], strides = [1, 1, 1, 1]} : vector<1x4x16x16xf32> to vector<1x1x16x16xf32>
    %46 = vector.shape_cast %45 : vector<1x1x16x16xf32> to vector<1x16x16xf32>
    %47 = vector.extract_strided_slice %38 {offsets = [0, 1, 0, 0], sizes = [1, 1, 16, 16], strides = [1, 1, 1, 1]} : vector<1x4x16x16xf32> to vector<1x1x16x16xf32>
    %48 = vector.shape_cast %47 : vector<1x1x16x16xf32> to vector<1x16x16xf32>
    %49 = arith.addf %46, %48 : vector<1x16x16xf32>
    %50 = vector.extract_strided_slice %38 {offsets = [0, 3, 0, 0], sizes = [1, 1, 16, 16], strides = [1, 1, 1, 1]} : vector<1x4x16x16xf32> to vector<1x1x16x16xf32>
    %51 = vector.shape_cast %50 : vector<1x1x16x16xf32> to vector<1x16x16xf32>
    %52 = arith.addf %49, %51 : vector<1x16x16xf32>
    %53 = vector.extract_strided_slice %38 {offsets = [0, 1, 0, 0], sizes = [1, 1, 16, 16], strides = [1, 1, 1, 1]} : vector<1x4x16x16xf32> to vector<1x1x16x16xf32>
    %54 = vector.shape_cast %53 : vector<1x1x16x16xf32> to vector<1x16x16xf32>
    %cst_90 = arith.constant 0.000000e+00 : f32
    %55 = vector.broadcast %cst_90 : f32 to vector<1x16x16xf32>
    %56 = arith.subf %55, %54 : vector<1x16x16xf32>
    %c0_91 = arith.constant 0 : index
    %c0_92 = arith.constant 0 : index
    %c0_93 = arith.constant 0 : index
    %c1_94 = arith.constant 1 : index
    %57 = vector.load %arg3[%c0_91, %c0_92, %c0_93, %c1_94] : memref<1x4x18x18xf32, #tpu.memory_space<vmem>>, vector<1x4x16x16xf32>
    %58 = arith.addf %38, %57 : vector<1x4x16x16xf32>
    %59 = vector.extract_strided_slice %57 {offsets = [0, 0, 0, 0], sizes = [1, 1, 16, 16], strides = [1, 1, 1, 1]} : vector<1x4x16x16xf32> to vector<1x1x16x16xf32>
    %60 = vector.shape_cast %59 : vector<1x1x16x16xf32> to vector<1x16x16xf32>
    %61 = arith.addf %42, %60 : vector<1x16x16xf32>
    %62 = vector.extract_strided_slice %57 {offsets = [0, 3, 0, 0], sizes = [1, 1, 16, 16], strides = [1, 1, 1, 1]} : vector<1x4x16x16xf32> to vector<1x1x16x16xf32>
    %63 = vector.shape_cast %62 : vector<1x1x16x16xf32> to vector<1x16x16xf32>
    %64 = arith.addf %61, %63 : vector<1x16x16xf32>
    %65 = vector.extract_strided_slice %57 {offsets = [0, 1, 0, 0], sizes = [1, 1, 16, 16], strides = [1, 1, 1, 1]} : vector<1x4x16x16xf32> to vector<1x1x16x16xf32>
    %66 = vector.shape_cast %65 : vector<1x1x16x16xf32> to vector<1x16x16xf32>
    %67 = arith.subf %52, %66 : vector<1x16x16xf32>
    %68 = vector.extract_strided_slice %57 {offsets = [0, 2, 0, 0], sizes = [1, 1, 16, 16], strides = [1, 1, 1, 1]} : vector<1x4x16x16xf32> to vector<1x1x16x16xf32>
    %69 = vector.shape_cast %68 : vector<1x1x16x16xf32> to vector<1x16x16xf32>
    %70 = arith.addf %67, %69 : vector<1x16x16xf32>
    %71 = vector.extract_strided_slice %57 {offsets = [0, 3, 0, 0], sizes = [1, 1, 16, 16], strides = [1, 1, 1, 1]} : vector<1x4x16x16xf32> to vector<1x1x16x16xf32>
    %72 = vector.shape_cast %71 : vector<1x1x16x16xf32> to vector<1x16x16xf32>
    %73 = arith.subf %70, %72 : vector<1x16x16xf32>
    %74 = vector.extract_strided_slice %57 {offsets = [0, 2, 0, 0], sizes = [1, 1, 16, 16], strides = [1, 1, 1, 1]} : vector<1x4x16x16xf32> to vector<1x1x16x16xf32>
    %75 = vector.shape_cast %74 : vector<1x1x16x16xf32> to vector<1x16x16xf32>
    %76 = arith.subf %56, %75 : vector<1x16x16xf32>
    %c0_95 = arith.constant 0 : index
    %c0_96 = arith.constant 0 : index
    %c0_97 = arith.constant 0 : index
    %c2_98 = arith.constant 2 : index
    %77 = vector.load %arg3[%c0_95, %c0_96, %c0_97, %c2_98] : memref<1x4x18x18xf32, #tpu.memory_space<vmem>>, vector<1x4x16x16xf32>
    %78 = arith.addf %58, %77 : vector<1x4x16x16xf32>
    %79 = vector.extract_strided_slice %77 {offsets = [0, 1, 0, 0], sizes = [1, 1, 16, 16], strides = [1, 1, 1, 1]} : vector<1x4x16x16xf32> to vector<1x1x16x16xf32>
    %80 = vector.shape_cast %79 : vector<1x1x16x16xf32> to vector<1x16x16xf32>
    %81 = arith.addf %64, %80 : vector<1x16x16xf32>
    %82 = vector.extract_strided_slice %77 {offsets = [0, 3, 0, 0], sizes = [1, 1, 16, 16], strides = [1, 1, 1, 1]} : vector<1x4x16x16xf32> to vector<1x1x16x16xf32>
    %83 = vector.shape_cast %82 : vector<1x1x16x16xf32> to vector<1x16x16xf32>
    %84 = arith.addf %81, %83 : vector<1x16x16xf32>
    %85 = vector.extract_strided_slice %77 {offsets = [0, 0, 0, 0], sizes = [1, 1, 16, 16], strides = [1, 1, 1, 1]} : vector<1x4x16x16xf32> to vector<1x1x16x16xf32>
    %86 = vector.shape_cast %85 : vector<1x1x16x16xf32> to vector<1x16x16xf32>
    %87 = arith.subf %44, %86 : vector<1x16x16xf32>
    %88 = vector.extract_strided_slice %77 {offsets = [0, 1, 0, 0], sizes = [1, 1, 16, 16], strides = [1, 1, 1, 1]} : vector<1x4x16x16xf32> to vector<1x1x16x16xf32>
    %89 = vector.shape_cast %88 : vector<1x1x16x16xf32> to vector<1x16x16xf32>
    %90 = arith.subf %87, %89 : vector<1x16x16xf32>
    %91 = vector.extract_strided_slice %77 {offsets = [0, 3, 0, 0], sizes = [1, 1, 16, 16], strides = [1, 1, 1, 1]} : vector<1x4x16x16xf32> to vector<1x1x16x16xf32>
    %92 = vector.shape_cast %91 : vector<1x1x16x16xf32> to vector<1x16x16xf32>
    %93 = arith.addf %90, %92 : vector<1x16x16xf32>
    %94 = vector.extract_strided_slice %77 {offsets = [0, 1, 0, 0], sizes = [1, 1, 16, 16], strides = [1, 1, 1, 1]} : vector<1x4x16x16xf32> to vector<1x1x16x16xf32>
    %95 = vector.shape_cast %94 : vector<1x1x16x16xf32> to vector<1x16x16xf32>
    %96 = arith.subf %76, %95 : vector<1x16x16xf32>
    %97 = vector.extract_strided_slice %77 {offsets = [0, 2, 0, 0], sizes = [1, 1, 16, 16], strides = [1, 1, 1, 1]} : vector<1x4x16x16xf32> to vector<1x1x16x16xf32>
    %98 = vector.shape_cast %97 : vector<1x1x16x16xf32> to vector<1x16x16xf32>
    %99 = arith.subf %96, %98 : vector<1x16x16xf32>
    %c0_99 = arith.constant 0 : index
    %c0_100 = arith.constant 0 : index
    %c1_101 = arith.constant 1 : index
    %c0_102 = arith.constant 0 : index
    %100 = vector.load %arg3[%c0_99, %c0_100, %c1_101, %c0_102] : memref<1x4x18x18xf32, #tpu.memory_space<vmem>>, vector<1x4x16x16xf32>
    %101 = arith.addf %78, %100 : vector<1x4x16x16xf32>
    %102 = vector.extract_strided_slice %100 {offsets = [0, 2, 0, 0], sizes = [1, 1, 16, 16], strides = [1, 1, 1, 1]} : vector<1x4x16x16xf32> to vector<1x1x16x16xf32>
    %103 = vector.shape_cast %102 : vector<1x1x16x16xf32> to vector<1x16x16xf32>
    %104 = arith.subf %84, %103 : vector<1x16x16xf32>
    %105 = vector.extract_strided_slice %100 {offsets = [0, 0, 0, 0], sizes = [1, 1, 16, 16], strides = [1, 1, 1, 1]} : vector<1x4x16x16xf32> to vector<1x1x16x16xf32>
    %106 = vector.shape_cast %105 : vector<1x1x16x16xf32> to vector<1x16x16xf32>
    %107 = arith.subf %93, %106 : vector<1x16x16xf32>
    %108 = vector.extract_strided_slice %100 {offsets = [0, 2, 0, 0], sizes = [1, 1, 16, 16], strides = [1, 1, 1, 1]} : vector<1x4x16x16xf32> to vector<1x1x16x16xf32>
    %109 = vector.shape_cast %108 : vector<1x1x16x16xf32> to vector<1x16x16xf32>
    %110 = arith.addf %107, %109 : vector<1x16x16xf32>
    %111 = vector.extract_strided_slice %100 {offsets = [0, 1, 0, 0], sizes = [1, 1, 16, 16], strides = [1, 1, 1, 1]} : vector<1x4x16x16xf32> to vector<1x1x16x16xf32>
    %112 = vector.shape_cast %111 : vector<1x1x16x16xf32> to vector<1x16x16xf32>
    %113 = arith.subf %73, %112 : vector<1x16x16xf32>
    %114 = vector.extract_strided_slice %100 {offsets = [0, 3, 0, 0], sizes = [1, 1, 16, 16], strides = [1, 1, 1, 1]} : vector<1x4x16x16xf32> to vector<1x1x16x16xf32>
    %115 = vector.shape_cast %114 : vector<1x1x16x16xf32> to vector<1x16x16xf32>
    %116 = arith.addf %113, %115 : vector<1x16x16xf32>
    %117 = vector.extract_strided_slice %100 {offsets = [0, 1, 0, 0], sizes = [1, 1, 16, 16], strides = [1, 1, 1, 1]} : vector<1x4x16x16xf32> to vector<1x1x16x16xf32>
    %118 = vector.shape_cast %117 : vector<1x1x16x16xf32> to vector<1x16x16xf32>
    %119 = arith.addf %99, %118 : vector<1x16x16xf32>
    %c0_103 = arith.constant 0 : index
    %c0_104 = arith.constant 0 : index
    %c1_105 = arith.constant 1 : index
    %c1_106 = arith.constant 1 : index
    %120 = vector.load %arg3[%c0_103, %c0_104, %c1_105, %c1_106] : memref<1x4x18x18xf32, #tpu.memory_space<vmem>>, vector<1x4x16x16xf32>
    %121 = arith.addf %101, %120 : vector<1x4x16x16xf32>
    %122 = vector.extract_strided_slice %120 {offsets = [0, 3, 0, 0], sizes = [1, 1, 16, 16], strides = [1, 1, 1, 1]} : vector<1x4x16x16xf32> to vector<1x1x16x16xf32>
    %123 = vector.shape_cast %122 : vector<1x1x16x16xf32> to vector<1x16x16xf32>
    %124 = arith.subf %104, %123 : vector<1x16x16xf32>
    %125 = vector.extract_strided_slice %120 {offsets = [0, 2, 0, 0], sizes = [1, 1, 16, 16], strides = [1, 1, 1, 1]} : vector<1x4x16x16xf32> to vector<1x1x16x16xf32>
    %126 = vector.shape_cast %125 : vector<1x1x16x16xf32> to vector<1x16x16xf32>
    %127 = arith.subf %110, %126 : vector<1x16x16xf32>
    %128 = vector.extract_strided_slice %120 {offsets = [0, 3, 0, 0], sizes = [1, 1, 16, 16], strides = [1, 1, 1, 1]} : vector<1x4x16x16xf32> to vector<1x1x16x16xf32>
    %129 = vector.shape_cast %128 : vector<1x1x16x16xf32> to vector<1x16x16xf32>
    %130 = arith.addf %127, %129 : vector<1x16x16xf32>
    %131 = vector.extract_strided_slice %120 {offsets = [0, 3, 0, 0], sizes = [1, 1, 16, 16], strides = [1, 1, 1, 1]} : vector<1x4x16x16xf32> to vector<1x1x16x16xf32>
    %132 = vector.shape_cast %131 : vector<1x1x16x16xf32> to vector<1x16x16xf32>
    %133 = arith.addf %116, %132 : vector<1x16x16xf32>
    %134 = vector.extract_strided_slice %120 {offsets = [0, 1, 0, 0], sizes = [1, 1, 16, 16], strides = [1, 1, 1, 1]} : vector<1x4x16x16xf32> to vector<1x1x16x16xf32>
    %135 = vector.shape_cast %134 : vector<1x1x16x16xf32> to vector<1x16x16xf32>
    %136 = arith.addf %119, %135 : vector<1x16x16xf32>
    %c0_107 = arith.constant 0 : index
    %c0_108 = arith.constant 0 : index
    %c1_109 = arith.constant 1 : index
    %c2_110 = arith.constant 2 : index
    %137 = vector.load %arg3[%c0_107, %c0_108, %c1_109, %c2_110] : memref<1x4x18x18xf32, #tpu.memory_space<vmem>>, vector<1x4x16x16xf32>
    %138 = arith.addf %121, %137 : vector<1x4x16x16xf32>
    %139 = vector.extract_strided_slice %137 {offsets = [0, 2, 0, 0], sizes = [1, 1, 16, 16], strides = [1, 1, 1, 1]} : vector<1x4x16x16xf32> to vector<1x1x16x16xf32>
    %140 = vector.shape_cast %139 : vector<1x1x16x16xf32> to vector<1x16x16xf32>
    %141 = arith.addf %124, %140 : vector<1x16x16xf32>
    %142 = vector.extract_strided_slice %137 {offsets = [0, 3, 0, 0], sizes = [1, 1, 16, 16], strides = [1, 1, 1, 1]} : vector<1x4x16x16xf32> to vector<1x1x16x16xf32>
    %143 = vector.shape_cast %142 : vector<1x1x16x16xf32> to vector<1x16x16xf32>
    %144 = arith.subf %141, %143 : vector<1x16x16xf32>
    %145 = vector.extract_strided_slice %137 {offsets = [0, 3, 0, 0], sizes = [1, 1, 16, 16], strides = [1, 1, 1, 1]} : vector<1x4x16x16xf32> to vector<1x1x16x16xf32>
    %146 = vector.shape_cast %145 : vector<1x1x16x16xf32> to vector<1x16x16xf32>
    %147 = arith.subf %130, %146 : vector<1x16x16xf32>
    %148 = vector.extract_strided_slice %137 {offsets = [0, 0, 0, 0], sizes = [1, 1, 16, 16], strides = [1, 1, 1, 1]} : vector<1x4x16x16xf32> to vector<1x1x16x16xf32>
    %149 = vector.shape_cast %148 : vector<1x1x16x16xf32> to vector<1x16x16xf32>
    %150 = arith.subf %133, %149 : vector<1x16x16xf32>
    %151 = vector.extract_strided_slice %137 {offsets = [0, 2, 0, 0], sizes = [1, 1, 16, 16], strides = [1, 1, 1, 1]} : vector<1x4x16x16xf32> to vector<1x1x16x16xf32>
    %152 = vector.shape_cast %151 : vector<1x1x16x16xf32> to vector<1x16x16xf32>
    %153 = arith.addf %136, %152 : vector<1x16x16xf32>
    %154 = vector.extract_strided_slice %137 {offsets = [0, 3, 0, 0], sizes = [1, 1, 16, 16], strides = [1, 1, 1, 1]} : vector<1x4x16x16xf32> to vector<1x1x16x16xf32>
    %155 = vector.shape_cast %154 : vector<1x1x16x16xf32> to vector<1x16x16xf32>
    %156 = arith.addf %153, %155 : vector<1x16x16xf32>
    %c0_111 = arith.constant 0 : index
    %c0_112 = arith.constant 0 : index
    %c2_113 = arith.constant 2 : index
    %c0_114 = arith.constant 0 : index
    %157 = vector.load %arg3[%c0_111, %c0_112, %c2_113, %c0_114] : memref<1x4x18x18xf32, #tpu.memory_space<vmem>>, vector<1x4x16x16xf32>
    %158 = arith.addf %138, %157 : vector<1x4x16x16xf32>
    %159 = vector.extract_strided_slice %157 {offsets = [0, 0, 0, 0], sizes = [1, 1, 16, 16], strides = [1, 1, 1, 1]} : vector<1x4x16x16xf32> to vector<1x1x16x16xf32>
    %160 = vector.shape_cast %159 : vector<1x1x16x16xf32> to vector<1x16x16xf32>
    %161 = arith.addf %144, %160 : vector<1x16x16xf32>
    %162 = vector.extract_strided_slice %157 {offsets = [0, 0, 0, 0], sizes = [1, 1, 16, 16], strides = [1, 1, 1, 1]} : vector<1x4x16x16xf32> to vector<1x1x16x16xf32>
    %163 = vector.shape_cast %162 : vector<1x1x16x16xf32> to vector<1x16x16xf32>
    %164 = arith.addf %147, %163 : vector<1x16x16xf32>
    %165 = vector.extract_strided_slice %157 {offsets = [0, 0, 0, 0], sizes = [1, 1, 16, 16], strides = [1, 1, 1, 1]} : vector<1x4x16x16xf32> to vector<1x1x16x16xf32>
    %166 = vector.shape_cast %165 : vector<1x1x16x16xf32> to vector<1x16x16xf32>
    %167 = arith.subf %150, %166 : vector<1x16x16xf32>
    %168 = vector.extract_strided_slice %157 {offsets = [0, 1, 0, 0], sizes = [1, 1, 16, 16], strides = [1, 1, 1, 1]} : vector<1x4x16x16xf32> to vector<1x1x16x16xf32>
    %169 = vector.shape_cast %168 : vector<1x1x16x16xf32> to vector<1x16x16xf32>
    %170 = arith.subf %167, %169 : vector<1x16x16xf32>
    %171 = vector.extract_strided_slice %157 {offsets = [0, 3, 0, 0], sizes = [1, 1, 16, 16], strides = [1, 1, 1, 1]} : vector<1x4x16x16xf32> to vector<1x1x16x16xf32>
    %172 = vector.shape_cast %171 : vector<1x1x16x16xf32> to vector<1x16x16xf32>
    %173 = arith.subf %170, %172 : vector<1x16x16xf32>
    %174 = vector.extract_strided_slice %157 {offsets = [0, 0, 0, 0], sizes = [1, 1, 16, 16], strides = [1, 1, 1, 1]} : vector<1x4x16x16xf32> to vector<1x1x16x16xf32>
    %175 = vector.shape_cast %174 : vector<1x1x16x16xf32> to vector<1x16x16xf32>
    %176 = arith.addf %156, %175 : vector<1x16x16xf32>
    %177 = vector.extract_strided_slice %157 {offsets = [0, 2, 0, 0], sizes = [1, 1, 16, 16], strides = [1, 1, 1, 1]} : vector<1x4x16x16xf32> to vector<1x1x16x16xf32>
    %178 = vector.shape_cast %177 : vector<1x1x16x16xf32> to vector<1x16x16xf32>
    %179 = arith.subf %176, %178 : vector<1x16x16xf32>
    %180 = vector.extract_strided_slice %157 {offsets = [0, 3, 0, 0], sizes = [1, 1, 16, 16], strides = [1, 1, 1, 1]} : vector<1x4x16x16xf32> to vector<1x1x16x16xf32>
    %181 = vector.shape_cast %180 : vector<1x1x16x16xf32> to vector<1x16x16xf32>
    %182 = arith.subf %179, %181 : vector<1x16x16xf32>
    %c0_115 = arith.constant 0 : index
    %c0_116 = arith.constant 0 : index
    %c2_117 = arith.constant 2 : index
    %c1_118 = arith.constant 1 : index
    %183 = vector.load %arg3[%c0_115, %c0_116, %c2_117, %c1_118] : memref<1x4x18x18xf32, #tpu.memory_space<vmem>>, vector<1x4x16x16xf32>
    %184 = arith.addf %158, %183 : vector<1x4x16x16xf32>
    %185 = vector.extract_strided_slice %183 {offsets = [0, 2, 0, 0], sizes = [1, 1, 16, 16], strides = [1, 1, 1, 1]} : vector<1x4x16x16xf32> to vector<1x1x16x16xf32>
    %186 = vector.shape_cast %185 : vector<1x1x16x16xf32> to vector<1x16x16xf32>
    %187 = arith.subf %161, %186 : vector<1x16x16xf32>
    %188 = vector.extract_strided_slice %183 {offsets = [0, 3, 0, 0], sizes = [1, 1, 16, 16], strides = [1, 1, 1, 1]} : vector<1x4x16x16xf32> to vector<1x1x16x16xf32>
    %189 = vector.shape_cast %188 : vector<1x1x16x16xf32> to vector<1x16x16xf32>
    %190 = arith.subf %187, %189 : vector<1x16x16xf32>
    %191 = vector.extract_strided_slice %183 {offsets = [0, 3, 0, 0], sizes = [1, 1, 16, 16], strides = [1, 1, 1, 1]} : vector<1x4x16x16xf32> to vector<1x1x16x16xf32>
    %192 = vector.shape_cast %191 : vector<1x1x16x16xf32> to vector<1x16x16xf32>
    %193 = arith.addf %164, %192 : vector<1x16x16xf32>
    %194 = vector.extract_strided_slice %183 {offsets = [0, 0, 0, 0], sizes = [1, 1, 16, 16], strides = [1, 1, 1, 1]} : vector<1x4x16x16xf32> to vector<1x1x16x16xf32>
    %195 = vector.shape_cast %194 : vector<1x1x16x16xf32> to vector<1x16x16xf32>
    %196 = arith.addf %173, %195 : vector<1x16x16xf32>
    %197 = vector.extract_strided_slice %183 {offsets = [0, 1, 0, 0], sizes = [1, 1, 16, 16], strides = [1, 1, 1, 1]} : vector<1x4x16x16xf32> to vector<1x1x16x16xf32>
    %198 = vector.shape_cast %197 : vector<1x1x16x16xf32> to vector<1x16x16xf32>
    %199 = arith.subf %196, %198 : vector<1x16x16xf32>
    %200 = vector.extract_strided_slice %183 {offsets = [0, 0, 0, 0], sizes = [1, 1, 16, 16], strides = [1, 1, 1, 1]} : vector<1x4x16x16xf32> to vector<1x1x16x16xf32>
    %201 = vector.shape_cast %200 : vector<1x1x16x16xf32> to vector<1x16x16xf32>
    %202 = arith.addf %182, %201 : vector<1x16x16xf32>
    %203 = vector.extract_strided_slice %183 {offsets = [0, 2, 0, 0], sizes = [1, 1, 16, 16], strides = [1, 1, 1, 1]} : vector<1x4x16x16xf32> to vector<1x1x16x16xf32>
    %204 = vector.shape_cast %203 : vector<1x1x16x16xf32> to vector<1x16x16xf32>
    %205 = arith.subf %202, %204 : vector<1x16x16xf32>
    %206 = vector.extract_strided_slice %183 {offsets = [0, 3, 0, 0], sizes = [1, 1, 16, 16], strides = [1, 1, 1, 1]} : vector<1x4x16x16xf32> to vector<1x1x16x16xf32>
    %207 = vector.shape_cast %206 : vector<1x1x16x16xf32> to vector<1x16x16xf32>
    %208 = arith.subf %205, %207 : vector<1x16x16xf32>
    %c0_119 = arith.constant 0 : index
    %c0_120 = arith.constant 0 : index
    %c2_121 = arith.constant 2 : index
    %c2_122 = arith.constant 2 : index
    %209 = vector.load %arg3[%c0_119, %c0_120, %c2_121, %c2_122] : memref<1x4x18x18xf32, #tpu.memory_space<vmem>>, vector<1x4x16x16xf32>
    %210 = arith.addf %184, %209 : vector<1x4x16x16xf32>
    %211 = vector.extract_strided_slice %209 {offsets = [0, 1, 0, 0], sizes = [1, 1, 16, 16], strides = [1, 1, 1, 1]} : vector<1x4x16x16xf32> to vector<1x1x16x16xf32>
    %212 = vector.shape_cast %211 : vector<1x1x16x16xf32> to vector<1x16x16xf32>
    %213 = arith.addf %190, %212 : vector<1x16x16xf32>
    %214 = vector.extract_strided_slice %209 {offsets = [0, 3, 0, 0], sizes = [1, 1, 16, 16], strides = [1, 1, 1, 1]} : vector<1x4x16x16xf32> to vector<1x1x16x16xf32>
    %215 = vector.shape_cast %214 : vector<1x1x16x16xf32> to vector<1x16x16xf32>
    %216 = arith.subf %213, %215 : vector<1x16x16xf32>
    %217 = vector.extract_strided_slice %209 {offsets = [0, 1, 0, 0], sizes = [1, 1, 16, 16], strides = [1, 1, 1, 1]} : vector<1x4x16x16xf32> to vector<1x1x16x16xf32>
    %218 = vector.shape_cast %217 : vector<1x1x16x16xf32> to vector<1x16x16xf32>
    %219 = arith.addf %193, %218 : vector<1x16x16xf32>
    %220 = vector.extract_strided_slice %209 {offsets = [0, 3, 0, 0], sizes = [1, 1, 16, 16], strides = [1, 1, 1, 1]} : vector<1x4x16x16xf32> to vector<1x1x16x16xf32>
    %221 = vector.shape_cast %220 : vector<1x1x16x16xf32> to vector<1x16x16xf32>
    %222 = arith.addf %208, %221 : vector<1x16x16xf32>
    %cst_123 = arith.constant 0.111111112 : f32
    %223 = vector.broadcast %cst_123 : f32 to vector<1x4x16x16xf32>
    %224 = arith.mulf %210, %223 : vector<1x4x16x16xf32>
    %225 = vector.shape_cast %224 : vector<1x4x16x16xf32> to vector<1x4x256xf32>
    %c0_124 = arith.constant 0 : index
    %c8 = arith.constant 8 : index
    %c0_125 = arith.constant 0 : index
    %226 = vector.load %arg2[%c0_124, %c8, %c0_125] : memref<1x12x256xf32, #tpu.memory_space<vmem>>, vector<1x4x256xf32>
    tpu.vector_store %arg2[%c0_124, %c8, %c0_125], %225 {strides = array<i32>} : memref<1x12x256xf32, #tpu.memory_space<vmem>>, vector<1x4x256xf32>,
    %227 = vector.shape_cast %216 : vector<1x16x16xf32> to vector<1x1x16x16xf32>
    %228 = vector.shape_cast %219 : vector<1x16x16xf32> to vector<1x1x16x16xf32>
    %229 = vector.shape_cast %199 : vector<1x16x16xf32> to vector<1x1x16x16xf32>
    %230 = vector.shape_cast %222 : vector<1x16x16xf32> to vector<1x1x16x16xf32>
    %231 = tpu.concatenate %227, %228, %229, %230 in 1 : vector<1x1x16x16xf32>, vector<1x1x16x16xf32>, vector<1x1x16x16xf32>, vector<1x1x16x16xf32> -> vector<1x4x16x16xf32>
    %cst_126 = arith.constant 0.000000e+00 : f32
    %232 = vector.broadcast %cst_126 : f32 to vector<1x4x16x16xf32>
    %233 = arith.maximumf %231, %232 : vector<1x4x16x16xf32>
    %234 = vector.shape_cast %233 : vector<1x4x16x16xf32> to vector<1x4x256xf32>
    %c0_127 = arith.constant 0 : index
    %c0_128 = arith.constant 0 : index
    %c0_129 = arith.constant 0 : index
    %235 = vector.load %arg2[%c0_127, %c0_128, %c0_129] : memref<1x12x256xf32, #tpu.memory_space<vmem>>, vector<1x4x256xf32>
    tpu.vector_store %arg2[%c0_127, %c0_128, %c0_129], %234 {strides = array<i32>} : memref<1x12x256xf32, #tpu.memory_space<vmem>>, vector<1x4x256xf32>,
    return
  }
  func.func @transform_0(%arg0: i32) -> (i32, i32, i32, i32) {
    %c0_i32 = arith.constant 0 : i32
    %c0_i32_0 = arith.constant 0 : i32
    %c0_i32_1 = arith.constant 0 : i32
    %c0_i32_2 = arith.constant 0 : i32
    return %arg0, %c0_i32, %c0_i32_0, %c0_i32_1 : i32, i32, i32, i32
  }
  func.func @transform_1(%arg0: i32) -> (i32, i32, i32) {
    %c0_i32 = arith.constant 0 : i32
    %c0_i32_0 = arith.constant 0 : i32
    %c0_i32_1 = arith.constant 0 : i32
    return %arg0, %c0_i32, %c0_i32_0 : i32, i32, i32
  }
}

</mosaic_0001>

<bundles_post_ra>
// kernel: tpu_custom_call.1
= control target key start
LH: loop header
LB: loop body
LE: loop exit
PB: predicated region body
PF: predicated region fallthrough
CT: control target
= control target key end

     0   :  { %6 = vsyncpa [#allocation5], 0  ;;  %s2897_s0 = inlined_call_operand.hbm [shape: f32[2,4,16,16], index: 0, kind: input, shape index: {}]   ;;  %s2898_s1 = inlined_call_operand.vmem [shape: f32[2,12,256], index: 1, kind: output, shape index: {}]  }
   0x1   :  { %8 = vsyncpa [#allocation5 + $0x1], 0  ;;  %s1745_s6 = smov 0   ;;  %s1747_s7 = smov 0  }
   0x2   :  { %s1749_s8 = smov 0   ;;  %s1751_s9 = smov 0  }
   0x3 LB: > { %s1764_s10 = sadd.s32 4294967295, %s1716_s9   ;;  %s1767_s11 = sadd.s32 1, %s1716_s9   ;;  %s1716_s9 = sphi %s1751_s9, %s3030_s9   ;;  %s1712_s8 = sphi %s1749_s8, %s3029_s8   ;;  %s1708_s7 = sphi %s1747_s7, %s3028_s7   ;;  %s1704_s6 = sphi %s1745_s6, %s3027_s6  }
   0x4   : > { %s18_s12 = ssub.s32 %s1716_s9, %s1767_s11  ;;  %s21_s13 = sadd.s32 1, %s1712_s8 }
   0x5   : > { %p19_p0 = scmp.eq.s32.totalorder %s18_s12, 0  ;;  %p28_p1 = scmp.ne.s32.totalorder %s1712_s8, %s1708_s7 }
   0x6   : > { %p29_p2 = scmp.eq.s32.totalorder %s1716_s9, 0  ;;  %p34_p3 = scmp.ne.s32.totalorder %s1708_s7, %s1704_s6 }
   0x7   : > { %s1777_s14 = scalar_select %p19_p0, %s1712_s8, %s21_s13  }
   0x8   : > { %p30_p4 = por %p29_p2, %p28_p1  ;;  %p35_p5 = scmp.eq.s32.totalorder %s1764_s10, 0 }
   0x9   : > { %p1603_p6 = scmp.lt.s32.totalorder %s1716_s9, 2  ;;  %s84_s16 = sand.u32 1, %s1712_s8  }
   0xa   : > { %p1781_p7 = por %p35_p5, %p34_p3  ;;  %s1586_s17 = sshll.u32 %s84_s16, 6 }
   0xb   : > { %s1595_s18 = sshll.u32 %s1716_s9, 10  ;;  %s88_s22 = scalar_lea.vmem [#allocation4], %s1586_s17 }
   0xc   : > { %s1790_s21 = scalar_lea.hbm %s2897_s0, %s1595_s18  ;;  %s95_s23 = sshll.u32 %s88_s22, 4  ;;  %s1792_s23 = int_to_ptr.vmem [resolvable:$true] %s95_s23 }
   0xd   : > { %p1794_p8 = pnand %p1603_p6, %p30_p4  ;;  %s1799_s25 = scalar_lea.sflag [#allocation5], %s84_s16 }
   0xe   : > { %s1652_s26 = scalar_lea.hbm %s1790_s21, 1024  ;;  %s1657_s29 = scalar_lea.hbm %s2897_s0, 2048 }
   0xf   : > { %p1653_p10 = scmp.ne.s32.totalorder %s1790_s21, %s1652_s26  ;;  %p1654_p11 = pneg %p1794_p8 }
  0x10   : > { %p1658_p0 = scmp.lt.u32.totalorder %s1790_s21, %s2897_s0  ;;  %p1659_p1 = scmp.lt.u32.totalorder %s1657_s29, %s1652_s26 }
  0x11   : > { %p1655_p12 = pnand %p1654_p11, %p1653_p10  ;;  %p1661_p3 = scmp.lt.u32.totalorder %s1652_s26, %s1790_s21 }
  0x12   : > { %p1660_p2 = por %p1659_p1, %p1658_p0 }
  0x13   : > { %p1656_p13 = pneg %p1655_p12 }
  0x14   : > { %p1662_p4 = por %p1661_p3, %p1660_p2 }
  0x16   : > { %p1663_p5 = pnand %p1662_p4, %p1656_p13 }
  0x18   : > { %1666 = shalt.err (!%p1663_p5)
}
  0x19   : > { %s1667_s3 = scalar_lea.vmem %s1792_s23, 1024  ;;  %s1718_s4 = smov [#allocation4]  }
  0x1a   : > { %p1668_p6 = scmp.ne.s32.totalorder %s1792_s23, %s1667_s3  ;;  %s1672_s5 = sshll.u32 %s1718_s4, 4  ;;  %s1673_s5 = int_to_ptr.vmem [resolvable:$false] %s1672_s5 }
  0x1b   : > { %s1674_s6 = scalar_lea.vmem %s1673_s5, 2048  ;;  %p1675_p9 = scmp.lt.s32.totalorder %s1792_s23, %s1673_s5 }
  0x1c   : > { %p1670_p10 = pnand %p1668_p6, %p1654_p11  ;;  %p1676_p0 = scmp.lt.s32.totalorder %s1674_s6, %s1667_s3 }
  0x1e   : > { %p1671_p12 = pneg %p1670_p10  ;;  %p1677_p1 = por %p1676_p0, %p1675_p9 }
  0x20   : > { %p1678_p2 = pnand %p1677_p1, %p1671_p12 }
  0x22   : > { %1681 = shalt.err (!%p1678_p2)
}
  0x23   : > { %s1719_s12 = smov 128   ;;  %s1720_s13 = smov 8  }
  0x24   : > { %1602 = dma.hbm_to_vmem [thread:$0]  (!%p1794_p8), %s1790_s21, 1024, %s1792_s23, %s1799_s25, %s1719_s12, %s1719_s12, %s1720_s13  }
  0x25   : > { %p103_p11 = scmp.lt.s32.totalorder %s1716_s9, 3  ;;  %p2954_p13 = scmp.ge.s32.totalorder %s1716_s9, 1 }
  0x27   : > { %p104_p3 = pnand %p2954_p13, %p103_p11 }
  0x29   : > { %107 = sbr.rel (%p104_p3) target bundleno = 684 (0x2ac), region = 24 }
  0x30   : > { %s109_s16 = sand.u32 1, %s1708_s7  }
  0x31   : > { %s1590_s17 = sshll.u32 %s109_s16, 6  ;;  %s110_s18 = scalar_lea.sflag [#allocation5], %s109_s16 }
  0x32   : > { %s1831_s19 = scalar_lea.vmem [#allocation4], %s1590_s17 }
  0x33   : > { %1699 = dma.done.wait (%p1781_p7), %s110_s18, 1024  }
  0x34   : > { %1701 = vsyncadd (%p1781_p7), %s110_s18, 4294966272  ;;  %vm194_vm0 = vcmask 139264   ;;  %v1721_v0 = vmov -inf   ;;  %v2899_v1 = vmov 0.0   ;;  %v137_v2 = vld [vmem:[%s1831_s19] sm:$0xff]  ;;  %v139_v3 = vld [vmem:[%s1831_s19 + $0x10] sm:$0xff] }
  0x35   : > { %203 = vst.msk [vmem:[#allocation3] sm:$0x1] %vm194_vm0, %v1721_v0  ;;  %195 = vst.msk [vmem:[#allocation2] sm:$0x1] %vm194_vm0, %v2899_v1  ;;  %s1723_s9 = smov 1   ;;  %v138_v4 = vld [vmem:[%s1831_s19 + $0x8] sm:$0xff] }
  0x36   : > { %196 = vst.msk [vmem:[#allocation2 + $0x18] sm:$0x1] %vm194_vm0, %v2899_v1  ;;  %197 = vst.msk [vmem:[#allocation2 + $0x30] sm:$0x1] %vm194_vm0, %v2899_v1  ;;  %153 = vrot.lane.b32.xlu0 %v137_v2, %s1723_s9  ;;  %157 = vrot.lane.b32.xlu1 %v139_v3, %s1723_s9  ;;  %v140_v5 = vld [vmem:[%s1831_s19 + $0x18] sm:$0xff]  ;;  %v141_v6 = vld [vmem:[%s1831_s19 + $0x20] sm:$0xff] }
  0x37   : > { %198 = vst.msk [vmem:[#allocation2 + $0x48] sm:$0x1] %vm194_vm0, %v2899_v1  ;;  %199 = vst.msk [vmem:[#allocation2 + $0x11] sm:$0x1] %vm194_vm0, %v2899_v1  ;;  %v142_v7 = vld [vmem:[%s1831_s19 + $0x28] sm:$0xff]  ;;  %v143_v8 = vld [vmem:[%s1831_s19 + $0x30] sm:$0xff] }
  0x38   : > { %200 = vst.msk [vmem:[#allocation2 + $0x29] sm:$0x1] %vm194_vm0, %v2899_v1  ;;  %201 = vst.msk [vmem:[#allocation2 + $0x41] sm:$0x1] %vm194_vm0, %v2899_v1  ;;  %v144_v9 = vld [vmem:[%s1831_s19 + $0x38] sm:$0xff]  ;;  %vm177_vm1 = vcmask 138248  }
  0x39   : > { %202 = vst.msk [vmem:[#allocation2 + $0x59] sm:$0x1] %vm194_vm0, %v2899_v1  ;;  %204 = vst.msk [vmem:[#allocation3 + $0x18] sm:$0x1] %vm194_vm0, %v1721_v0  ;;  %vm211_vm2 = vcmask 7168   ;;  %vm220_vm3 = vcmask 146568  }
  0x3a   : > { %205 = vst.msk [vmem:[#allocation3 + $0x30] sm:$0x1] %vm194_vm0, %v1721_v0  ;;  %206 = vst.msk [vmem:[#allocation3 + $0x48] sm:$0x1] %vm194_vm0, %v1721_v0  ;;  %155 = vrot.lane.b32.xlu0 %v138_v4, %s1723_s9  ;;  %159 = vrot.lane.b32.xlu1 %v140_v5, %s1723_s9  ;;  %s1724_s15 = smov 127   ;;  %s1725_s20 = smov 126  }
  0x3b   : > { %207 = vst.msk [vmem:[#allocation3 + $0x11] sm:$0x1] %vm194_vm0, %v1721_v0  ;;  %208 = vst.msk [vmem:[#allocation3 + $0x29] sm:$0x1] %vm194_vm0, %v1721_v0  ;;  %s1728_s21 = smov 32   ;;  %s1729_s22 = smov 64  }
  0x3c   : > { %209 = vst.msk [vmem:[#allocation3 + $0x41] sm:$0x1] %vm194_vm0, %v1721_v0  ;;  %210 = vst.msk [vmem:[#allocation3 + $0x59] sm:$0x1] %vm194_vm0, %v1721_v0  ;;  %s1730_s23 = smov 96   ;;  %s1731_s24 = smov 16  }
  0x3d   : > { %s1732_s25 = smov 48   ;;  %s1733_s26 = smov 80   ;;  %vm693_vm4 = vcmask 130048   ;;  %vm695_vm5 = vcmask 261120   ;;  %vm697_vm6 = vcmask 392192   ;;  %vm699_vm7 = vcmask 523264  }
  0x3e   : > { %161 = vrot.lane.b32.xlu0 %v141_v6, %s1723_s9  ;;  %163 = vrot.lane.b32.xlu1 %v142_v7, %s1723_s9  ;;  %s1734_s27 = smov 112   ;;  %p132_p7 = scmp.lt.s32.totalorder %s1764_s10, 1  ;;  %vm701_vm8 = vcmask 654336   ;;  %vm703_vm9 = vcmask 785408   ;;  %vm705_vm10 = vcmask 916480  }
  0x40   : > { %s3032_s10 = smov (!%p132_p7, %s1764_s10), 1 }
  0x41   : > { %s1596_s28 = sshll.u32 %s3032_s10, 5 }
  0x42   : > { %165 = vrot.lane.b32.xlu0 %v143_v8, %s1723_s9  ;;  %167 = vrot.lane.b32.xlu1 %v144_v9, %s1723_s9  ;;  %s2814_s2 = scalar_lea.vmem %s2898_s1, %s1596_s28 }
  0xa8   : > { %v154_v10 = vpop.permute.xlu0 %153  ;;  %v158_v11 = vpop.permute.xlu1 %157 }
  0xa9   : > { %178 = vst.msk [vmem:[#allocation2 + $0x1] sm:$0xff] %vm177_vm1, %v154_v10  ;;  %186 = vst.msk [vmem:[#allocation3 + $0x1] sm:$0xff] %vm177_vm1, %v154_v10 }
  0xaa   : > { %180 = vst.msk [vmem:[#allocation2 + $0x19] sm:$0xff] %vm177_vm1, %v158_v11  ;;  %188 = vst.msk [vmem:[#allocation3 + $0x19] sm:$0xff] %vm177_vm1, %v158_v11 }
  0xab   : > { %212 = vst.msk [vmem:[#allocation2 + $0x1] sm:$0xff] %vm211_vm2, %v2899_v1  ;;  %229 = vst.msk [vmem:[#allocation3 + $0x1] sm:$0xff] %vm211_vm2, %v1721_v0 }
  0xac   : > { %214 = vst.msk [vmem:[#allocation2 + $0x19] sm:$0xff] %vm211_vm2, %v2899_v1  ;;  %231 = vst.msk [vmem:[#allocation3 + $0x19] sm:$0xff] %vm211_vm2, %v1721_v0  ;;  %v156_v12 = vpop.permute.xlu0 %155  ;;  %v160_v13 = vpop.permute.xlu1 %159 }
  0xad   : > { %221 = vst.msk [vmem:[#allocation2 + $0x1] sm:$0xff] %vm220_vm3, %v2899_v1  ;;  %237 = vst.msk [vmem:[#allocation3 + $0x1] sm:$0xff] %vm220_vm3, %v1721_v0 }
  0xae   : > { %223 = vst.msk [vmem:[#allocation2 + $0x19] sm:$0xff] %vm220_vm3, %v2899_v1  ;;  %239 = vst.msk [vmem:[#allocation3 + $0x19] sm:$0xff] %vm220_vm3, %v1721_v0 }
  0xaf   : > { %179 = vst.msk [vmem:[#allocation2 + $0x9] sm:$0xff] %vm177_vm1, %v156_v12  ;;  %187 = vst.msk [vmem:[#allocation3 + $0x9] sm:$0xff] %vm177_vm1, %v156_v12 }
  0xb0   : > { %181 = vst.msk [vmem:[#allocation2 + $0x21] sm:$0xff] %vm177_vm1, %v160_v13  ;;  %189 = vst.msk [vmem:[#allocation3 + $0x21] sm:$0xff] %vm177_vm1, %v160_v13  ;;  %v162_v14 = vpop.permute.xlu0 %161  ;;  %v164_v15 = vpop.permute.xlu1 %163 }
  0xb1   : > { %213 = vst.msk [vmem:[#allocation2 + $0x9] sm:$0xff] %vm211_vm2, %v2899_v1  ;;  %230 = vst.msk [vmem:[#allocation3 + $0x9] sm:$0xff] %vm211_vm2, %v1721_v0 }
  0xb2   : > { %215 = vst.msk [vmem:[#allocation2 + $0x21] sm:$0xff] %vm211_vm2, %v2899_v1  ;;  %232 = vst.msk [vmem:[#allocation3 + $0x21] sm:$0xff] %vm211_vm2, %v1721_v0 }
  0xb3   : > { %222 = vst.msk [vmem:[#allocation2 + $0x9] sm:$0xff] %vm220_vm3, %v2899_v1  ;;  %238 = vst.msk [vmem:[#allocation3 + $0x9] sm:$0xff] %vm220_vm3, %v1721_v0 }
  0xb4   : > { %224 = vst.msk [vmem:[#allocation2 + $0x21] sm:$0xff] %vm220_vm3, %v2899_v1  ;;  %240 = vst.msk [vmem:[#allocation3 + $0x21] sm:$0xff] %vm220_vm3, %v1721_v0  ;;  %v1925_v16 = vld [vmem:[#allocation3] sm:$0xff]  ;;  %v166_v17 = vpop.permute.xlu0 %165  ;;  %v168_v19 = vpop.permute.xlu1 %167 }
  0xb5   : > { %182 = vst.msk [vmem:[#allocation2 + $0x31] sm:$0xff] %vm177_vm1, %v162_v14  ;;  %190 = vst.msk [vmem:[#allocation3 + $0x31] sm:$0xff] %vm177_vm1, %v162_v14  ;;  %261 = vrot.lane.b32.xlu0 %v1925_v16, %s1724_s15  ;;  %v1941_v18 = vld [vmem:[#allocation3 + $0x18] sm:$0xff]  ;;  %v2003_v26 = vld [vmem:[#allocation3 + $0x1] sm:$0xff] }
  0xb6   : > { %183 = vst.msk [vmem:[#allocation2 + $0x39] sm:$0xff] %vm177_vm1, %v164_v15  ;;  %191 = vst.msk [vmem:[#allocation3 + $0x39] sm:$0xff] %vm177_vm1, %v164_v15  ;;  %v2011_v28 = vld [vmem:[#allocation3 + $0x19] sm:$0xff]  ;;  %v2217_v11 = vld [vmem:[#allocation2 + $0x1] sm:$0xff] }
  0xb7   : > { %216 = vst.msk [vmem:[#allocation2 + $0x31] sm:$0xff] %vm211_vm2, %v2899_v1  ;;  %233 = vst.msk [vmem:[#allocation3 + $0x31] sm:$0xff] %vm211_vm2, %v1721_v0  ;;  %v2113_v45 = vld [vmem:[#allocation2] sm:$0xff]  ;;  %v2121_v47 = vld [vmem:[#allocation2 + $0x18] sm:$0xff] }
  0xb8   : > { %217 = vst.msk [vmem:[#allocation2 + $0x39] sm:$0xff] %vm211_vm2, %v2899_v1  ;;  %234 = vst.msk [vmem:[#allocation3 + $0x39] sm:$0xff] %vm211_vm2, %v1721_v0  ;;  %v2169_v59 = vld [vmem:[#allocation2 + $0x19] sm:$0xff] }
  0xb9   : > { %225 = vst.msk [vmem:[#allocation2 + $0x31] sm:$0xff] %vm220_vm3, %v2899_v1  ;;  %241 = vst.msk [vmem:[#allocation3 + $0x31] sm:$0xff] %vm220_vm3, %v1721_v0  ;;  %265 = vrot.lane.b32.xlu0 %v1941_v18, %s1724_s15 }
  0xba   : > { %226 = vst.msk [vmem:[#allocation2 + $0x39] sm:$0xff] %vm220_vm3, %v2899_v1  ;;  %242 = vst.msk [vmem:[#allocation3 + $0x39] sm:$0xff] %vm220_vm3, %v1721_v0  ;;  %v1951_v20 = vld [vmem:[#allocation3 + $0x8] sm:$0xff] }
  0xbb   : > { %184 = vst.msk [vmem:[#allocation2 + $0x49] sm:$0xff] %vm177_vm1, %v166_v17  ;;  %192 = vst.msk [vmem:[#allocation3 + $0x49] sm:$0xff] %vm177_vm1, %v166_v17  ;;  %263 = vrot.lane.b32.xlu1 %v1951_v20, %s1724_s15  ;;  %v1969_v21 = vld [vmem:[#allocation3 + $0x20] sm:$0xff]  ;;  %v2009_v27 = vld [vmem:[#allocation3 + $0x9] sm:$0xff] }
  0xbc   : > { %185 = vst.msk [vmem:[#allocation2 + $0x51] sm:$0xff] %vm177_vm1, %v168_v19  ;;  %193 = vst.msk [vmem:[#allocation3 + $0x51] sm:$0xff] %vm177_vm1, %v168_v19  ;;  %v2017_v29 = vld [vmem:[#allocation3 + $0x21] sm:$0xff]  ;;  %v2057_v35 = vld [vmem:[#allocation3 + $0xa] sm:$0xff] }
  0xbd   : > { %218 = vst.msk [vmem:[#allocation2 + $0x49] sm:$0xff] %vm211_vm2, %v2899_v1  ;;  %235 = vst.msk [vmem:[#allocation3 + $0x49] sm:$0xff] %vm211_vm2, %v1721_v0  ;;  %v2051_v34 = vld [vmem:[#allocation3 + $0x2] sm:$0xff]  ;;  %v2059_v36 = vld [vmem:[#allocation3 + $0x1a] sm:$0xff] }
  0xbe   : > { %219 = vst.msk [vmem:[#allocation2 + $0x51] sm:$0xff] %vm211_vm2, %v2899_v1  ;;  %236 = vst.msk [vmem:[#allocation3 + $0x51] sm:$0xff] %vm211_vm2, %v1721_v0  ;;  %v2065_v37 = vld [vmem:[#allocation3 + $0x22] sm:$0xff]  ;;  %v2233_v17 = vld [vmem:[#allocation2 + $0xa] sm:$0xff] }
  0xbf   : > { %227 = vst.msk [vmem:[#allocation2 + $0x49] sm:$0xff] %vm220_vm3, %v2899_v1  ;;  %243 = vst.msk [vmem:[#allocation3 + $0x49] sm:$0xff] %vm220_vm3, %v1721_v0  ;;  %267 = vrot.lane.b32.xlu1 %v1969_v21, %s1724_s15  ;;  %v2107_v44 = vld [vmem:[#allocation2 + $0x8] sm:$0xff]  ;;  %v2115_v46 = vld [vmem:[#allocation2 + $0x20] sm:$0xff] }
  0xc0   : > { %228 = vst.msk [vmem:[#allocation2 + $0x51] sm:$0xff] %vm220_vm3, %v2899_v1  ;;  %244 = vst.msk [vmem:[#allocation3 + $0x51] sm:$0xff] %vm220_vm3, %v1721_v0  ;;  %v1971_v22 = vld [vmem:[#allocation3 + $0x30] sm:$0xff]  ;;  %v2157_v55 = vld [vmem:[#allocation2 + $0x21] sm:$0xff] }
  0xc1   : > { %269 = vrot.lane.b32.xlu0 %v1971_v22, %s1724_s15  ;;  %v1977_v23 = vld [vmem:[#allocation3 + $0x38] sm:$0xff]  ;;  %2955 = vst [vmem:[#allocation7_spill] sm:$0xff] %v2057_v35  ;;  %2956 = vst [vmem:[#allocation8_spill] sm:$0xff] %v2065_v37  ;;  %v2105_v43 = vld [vmem:[#allocation2 + $0x30] sm:$0xff] }
  0xc2   : > { %v2019_v30 = vld [vmem:[#allocation3 + $0x31] sm:$0xff]  ;;  %v2025_v31 = vld [vmem:[#allocation3 + $0x39] sm:$0xff]  ;;  %2959 = vst [vmem:[#allocation11_spill] sm:$0xff] %v2105_v43  ;;  %2960 = vst [vmem:[#allocation12_spill] sm:$0xff] %v2107_v44 }
  0xc3   : > { %271 = vrot.lane.b32.xlu1 %v1977_v23, %s1724_s15  ;;  %v2067_v38 = vld [vmem:[#allocation3 + $0x32] sm:$0xff]  ;;  %v2073_v39 = vld [vmem:[#allocation3 + $0x3a] sm:$0xff]  ;;  %2961 = vst [vmem:[#allocation13_spill] sm:$0xff] %v2113_v45  ;;  %2962 = vst [vmem:[#allocation14_spill] sm:$0xff] %v2115_v46 }
  0xc4   : > { %v2099_v42 = vld [vmem:[#allocation2 + $0x38] sm:$0xff]  ;;  %2963 = vst [vmem:[#allocation15_spill] sm:$0xff] %v2121_v47  ;;  %2966 = vst [vmem:[#allocation18_spill] sm:$0xff] %v2157_v55  ;;  %v2207_v8 = vld [vmem:[#allocation2 + $0x9] sm:$0xff] }
  0xc5   : > { %2958 = vst [vmem:[#allocation10_spill] sm:$0xff] %v2099_v42  ;;  %v2167_v58 = vld [vmem:[#allocation2 + $0x39] sm:$0xff]  ;;  %2968 = vst [vmem:[#allocation20_spill] sm:$0xff] %v2169_v59  ;;  %v2181_v63 = vld [vmem:[#allocation2 + $0x31] sm:$0xff] }
  0xc6   : > { %v1979_v24 = vld [vmem:[#allocation3 + $0x48] sm:$0xff]  ;;  %2967 = vst [vmem:[#allocation19_spill] sm:$0xff] %v2167_v58  ;;  %2970 = vst [vmem:[#allocation22_spill] sm:$0xff] %v2181_v63 }
  0xc7   : > { %273 = vrot.lane.b32.xlu0 %v1979_v24, %s1724_s15  ;;  %v1985_v25 = vld [vmem:[#allocation3 + $0x50] sm:$0xff]  ;;  %v2133_v49 = vld [vmem:[#allocation2 + $0x48] sm:$0xff]  ;;  %2972 = vst [vmem:[#allocation24_spill] sm:$0xff] %v2207_v8  ;;  %2973 = vst [vmem:[#allocation25_spill] sm:$0xff] %v2217_v11 }
  0xc8   : > { %275 = vrot.lane.b32.xlu1 %v1985_v25, %s1724_s15  ;;  %v2027_v32 = vld [vmem:[#allocation3 + $0x49] sm:$0xff]  ;;  %v2033_v33 = vld [vmem:[#allocation3 + $0x51] sm:$0xff]  ;;  %2965 = vst [vmem:[#allocation17_spill] sm:$0xff] %v2133_v49  ;;  %2974 = vst [vmem:[#allocation26_spill] sm:$0xff] %v2233_v17 }
  0xc9   : > { %v2075_v40 = vld [vmem:[#allocation3 + $0x4a] sm:$0xff]  ;;  %v2081_v41 = vld [vmem:[#allocation3 + $0x52] sm:$0xff] }
  0xca   : > { %2957 = vst [vmem:[#allocation9_spill] sm:$0xff] %v2081_v41  ;;  %v2127_v48 = vld [vmem:[#allocation2 + $0x50] sm:$0xff] }
  0xcb   : > { %293 = vrot.lane.b32.xlu0 %v1925_v16, %s1725_s20  ;;  %2964 = vst [vmem:[#allocation16_spill] sm:$0xff] %v2127_v48  ;;  %v2179_v62 = vld [vmem:[#allocation2 + $0x51] sm:$0xff]  ;;  %v2191_v3 = vld [vmem:[#allocation2 + $0x49] sm:$0xff] }
  0xcc   : > { %295 = vrot.lane.b32.xlu1 %v1951_v20, %s1725_s20  ;;  %2969 = vst [vmem:[#allocation21_spill] sm:$0xff] %v2179_v62  ;;  %2971 = vst [vmem:[#allocation23_spill] sm:$0xff] %v2191_v3 }
  0xcf   : > { %297 = vrot.lane.b32.xlu0 %v1941_v18, %s1725_s20 }
  0xd0   : > { %299 = vrot.lane.b32.xlu1 %v1969_v21, %s1725_s20 }
  0xd3   : > { %301 = vrot.lane.b32.xlu0 %v1971_v22, %s1725_s20 }
  0xd4   : > { %303 = vrot.lane.b32.xlu1 %v1977_v23, %s1725_s20 }
  0xd7   : > { %305 = vrot.lane.b32.xlu0 %v1979_v24, %s1725_s20 }
  0xd8   : > { %307 = vrot.lane.b32.xlu1 %v1985_v25, %s1725_s20 }
  0xdb   : > { %349 = vrot.lane.b32.xlu0 %v2003_v26, %s1724_s15 }
  0xdc   : > { %351 = vrot.lane.b32.xlu1 %v2009_v27, %s1724_s15 }
  0xdf   : > { %353 = vrot.lane.b32.xlu0 %v2011_v28, %s1724_s15 }
  0xe0   : > { %355 = vrot.lane.b32.xlu1 %v2017_v29, %s1724_s15 }
  0xe3   : > { %357 = vrot.lane.b32.xlu0 %v2019_v30, %s1724_s15 }
  0xe4   : > { %359 = vrot.lane.b32.xlu1 %v2025_v31, %s1724_s15 }
  0xe7   : > { %361 = vrot.lane.b32.xlu0 %v2027_v32, %s1724_s15 }
  0xe8   : > { %363 = vrot.lane.b32.xlu1 %v2033_v33, %s1724_s15 }
  0xeb   : > { %381 = vrot.lane.b32.xlu0 %v2003_v26, %s1725_s20 }
  0xec   : > { %383 = vrot.lane.b32.xlu1 %v2009_v27, %s1725_s20 }
  0xef   : > { %385 = vrot.lane.b32.xlu0 %v2011_v28, %s1725_s20 }
  0xf0   : > { %387 = vrot.lane.b32.xlu1 %v2017_v29, %s1725_s20 }
  0xf3   : > { %389 = vrot.lane.b32.xlu0 %v2019_v30, %s1725_s20 }
  0xf4   : > { %391 = vrot.lane.b32.xlu1 %v2025_v31, %s1725_s20 }
  0xf7   : > { %393 = vrot.lane.b32.xlu0 %v2027_v32, %s1725_s20 }
  0xf8   : > { %395 = vrot.lane.b32.xlu1 %v2033_v33, %s1725_s20 }
  0xfb   : > { %437 = vrot.lane.b32.xlu0 %v2051_v34, %s1724_s15 }
  0xfc   : > { %439 = vrot.lane.b32.xlu1 %v2057_v35, %s1724_s15 }
  0xff   : > { %441 = vrot.lane.b32.xlu0 %v2059_v36, %s1724_s15 }
 0x100   : > { %443 = vrot.lane.b32.xlu1 %v2065_v37, %s1724_s15 }
 0x103   : > { %445 = vrot.lane.b32.xlu0 %v2067_v38, %s1724_s15 }
 0x104   : > { %447 = vrot.lane.b32.xlu1 %v2073_v39, %s1724_s15 }
 0x107   : > { %449 = vrot.lane.b32.xlu0 %v2075_v40, %s1724_s15 }
 0x108   : > { %451 = vrot.lane.b32.xlu1 %v2081_v41, %s1724_s15 }
 0x10b   : > { %469 = vrot.lane.b32.xlu0 %v2051_v34, %s1725_s20 }
 0x10c   : > { %471 = vrot.lane.b32.xlu1 %v2057_v35, %s1725_s20 }
 0x10f   : > { %473 = vrot.lane.b32.xlu0 %v2059_v36, %s1725_s20 }
 0x110   : > { %475 = vrot.lane.b32.xlu1 %v2065_v37, %s1725_s20 }
 0x113   : > { %477 = vrot.lane.b32.xlu0 %v2067_v38, %s1725_s20 }
 0x114   : > { %479 = vrot.lane.b32.xlu1 %v2073_v39, %s1725_s20 }
 0x117   : > { %481 = vrot.lane.b32.xlu0 %v2075_v40, %s1725_s20 }
 0x118   : > { %483 = vrot.lane.b32.xlu1 %v2081_v41, %s1725_s20 }
 0x11b   : > { %754 = vrot.lane.b32.xlu0 %v2099_v42, %s1724_s15 }
 0x11c   : > { %752 = vrot.lane.b32.xlu1 %v2105_v43, %s1724_s15 }
 0x11f   : > { %746 = vrot.lane.b32.xlu0 %v2107_v44, %s1724_s15 }
 0x120   : > { %744 = vrot.lane.b32.xlu1 %v2113_v45, %s1724_s15 }
 0x123   : > { %794 = vrot.lane.b32.xlu0 %v2115_v46, %s1725_s20 }
 0x124   : > { %792 = vrot.lane.b32.xlu1 %v2121_v47, %s1725_s20 }
 0x127   : > { %750 = vrot.lane.b32.xlu0 %v2115_v46, %s1724_s15  ;;  %v2135_v50 = vpop.permute.xlu0 %261 }
 0x128   : > { %748 = vrot.lane.b32.xlu1 %v2121_v47, %s1724_s15 }
 0x12b   : > { %758 = vrot.lane.b32.xlu0 %v2127_v48, %s1724_s15  ;;  %v2143_v52 = vpop.permute.xlu0 %265 }
 0x12c   : > { %756 = vrot.lane.b32.xlu1 %v2133_v49, %s1724_s15 }
 0x12d   : > { %v2141_v51 = vpop.permute.xlu1 %263 }
 0x12f   : > { %798 = vrot.lane.b32.xlu0 %v2099_v42, %s1725_s20  ;;  %v2245_v42 = vld [vmem:[#allocation2 + $0x2] sm:$0xff] }
 0x130   : > { %796 = vrot.lane.b32.xlu1 %v2105_v43, %s1725_s20  ;;  %v2243_v43 = vld [vmem:[#allocation2 + $0x3a] sm:$0xff] }
 0x131   : > { %v2149_v53 = vpop.permute.xlu1 %267  ;;  %2975 = vst [vmem:[#allocation27_spill] sm:$0xff] %v2243_v43 }
 0x133   : > { %790 = vrot.lane.b32.xlu0 %v2107_v44, %s1725_s20  ;;  %v2151_v54 = vpop.permute.xlu0 %269 }
 0x134   : > { %788 = vrot.lane.b32.xlu1 %v2113_v45, %s1725_s20  ;;  %v2279_v45 = vld [vmem:[#allocation2 + $0x1a] sm:$0xff] }
 0x135   : > { %v2159_v56 = vpop.permute.xlu1 %271  ;;  %2978 = vst [vmem:[#allocation30_spill] sm:$0xff] %v2279_v45 }
 0x137   : > { %802 = vrot.lane.b32.xlu0 %v2127_v48, %s1725_s20 }
 0x138   : > { %800 = vrot.lane.b32.xlu1 %v2133_v49, %s1725_s20 }
 0x139   : > { %v2161_v57 = vpop.permute.xlu0 %273 }
 0x13a   : > { %v2171_v60 = vpop.permute.xlu1 %275 }
 0x13b   : > { %876 = vrot.lane.b32.xlu0 %v2157_v55, %s1724_s15 }
 0x13c   : > { %874 = vrot.lane.b32.xlu1 %v2169_v59, %s1724_s15 }
 0x13d   : > { %v2173_v61 = vpop.permute.xlu0 %293 }
 0x13e   : > { %v2183_v0 = vpop.permute.xlu1 %295 }
 0x13f   : > { %922 = vrot.lane.b32.xlu0 %v2167_v58, %s1725_s20 }
 0x140   : > { %920 = vrot.lane.b32.xlu1 %v2181_v63, %s1725_s20 }
 0x141   : > { %v2185_v2 = vpop.permute.xlu0 %297 }
 0x142   : > { %v2193_v4 = vpop.permute.xlu1 %299 }
 0x143   : > { %884 = vrot.lane.b32.xlu0 %v2179_v62, %s1724_s15 }
 0x144   : > { %882 = vrot.lane.b32.xlu1 %v2191_v3, %s1724_s15 }
 0x145   : > { %v302_v5 = vpop.permute.xlu0 %301 }
 0x146   : > { %v2199_v6 = vpop.permute.xlu1 %303 }
 0x147   : > { %926 = vrot.lane.b32.xlu0 %v2179_v62, %s1725_s20 }
 0x148   : > { %924 = vrot.lane.b32.xlu1 %v2191_v3, %s1725_s20 }
 0x149   : > { %v2201_v7 = vpop.permute.xlu0 %305 }
 0x14a   : > { %v2209_v9 = vpop.permute.xlu1 %307 }
 0x14b   : > { %880 = vrot.lane.b32.xlu0 %v2167_v58, %s1724_s15 }
 0x14c   : > { %878 = vrot.lane.b32.xlu1 %v2181_v63, %s1724_s15  ;;  %v2257_v63 = vld [vmem:[#allocation2 + $0x32] sm:$0xff] }
 0x14d   : > { %v2211_v10 = vpop.permute.xlu0 %349 }
 0x14e   : > { %v2219_v12 = vpop.permute.xlu1 %351 }
 0x14f   : > { %914 = vrot.lane.b32.xlu0 %v2207_v8, %s1725_s20 }
 0x150   : > { %912 = vrot.lane.b32.xlu1 %v2217_v11, %s1725_s20 }
 0x151   : > { %v2221_v13 = vpop.permute.xlu0 %353 }
 0x152   : > { %v2227_v14 = vpop.permute.xlu1 %355 }
 0x153   : > { %872 = vrot.lane.b32.xlu0 %v2207_v8, %s1724_s15 }
 0x154   : > { %870 = vrot.lane.b32.xlu1 %v2217_v11, %s1724_s15  ;;  %v2255_v11 = vld [vmem:[#allocation2 + $0x52] sm:$0xff] }
 0x155   : > { %v358_v15 = vpop.permute.xlu0 %357 }
 0x156   : > { %v2235_v19 = vpop.permute.xlu1 %359 }
 0x157   : > { %918 = vrot.lane.b32.xlu0 %v2157_v55, %s1725_s20  ;;  %v2269_v55 = vld [vmem:[#allocation2 + $0x4a] sm:$0xff] }
 0x158   : > { %916 = vrot.lane.b32.xlu1 %v2169_v59, %s1725_s20  ;;  %v2267_v59 = vld [vmem:[#allocation2 + $0x22] sm:$0xff] }
 0x159   : > { %v2237_v1 = vpop.permute.xlu0 %361  ;;  %2976 = vst [vmem:[#allocation28_spill] sm:$0xff] %v2267_v59 }
 0x15a   : > { %v2247_v3 = vpop.permute.xlu1 %363 }
 0x15b   : > { %998 = vrot.lane.b32.xlu0 %v2233_v17, %s1724_s15 }
 0x15c   : > { %996 = vrot.lane.b32.xlu1 %v2245_v42, %s1724_s15 }
 0x15d   : > { %v2249_v8 = vpop.permute.xlu0 %381 }
 0x15e   : > { %v2259_v62 = vpop.permute.xlu1 %383 }
 0x15f   : > { %1006 = vrot.lane.b32.xlu0 %v2243_v43, %s1724_s15 }
 0x160   : > { %1004 = vrot.lane.b32.xlu1 %v2257_v63, %s1724_s15 }
 0x161   : > { %v2261_v58 = vpop.permute.xlu0 %385 }
 0x162   : > { %v2271_v49 = vpop.permute.xlu1 %387 }
 0x163   : > { %1010 = vrot.lane.b32.xlu0 %v2255_v11, %s1724_s15  ;;  %2977 = vst [vmem:[#allocation29_spill] sm:$0xff] %v2271_v49 }
 0x164   : > { %1008 = vrot.lane.b32.xlu1 %v2269_v55, %s1724_s15 }
 0x165   : > { %v2273_v48 = vpop.permute.xlu0 %389 }
 0x166   : > { %v2281_v47 = vpop.permute.xlu1 %391 }
 0x167   : > { %1002 = vrot.lane.b32.xlu0 %v2267_v59, %s1724_s15 }
 0x168   : > { %1000 = vrot.lane.b32.xlu1 %v2279_v45, %s1724_s15 }
 0x169   : > { %v2283_v44 = vpop.permute.xlu0 %393 }
 0x16a   : > { %v2289_v46 = vpop.permute.xlu1 %395 }
 0x16b   : > { %1050 = vrot.lane.b32.xlu0 %v2267_v59, %s1725_s20  ;;  %2979 = vst [vmem:[#allocation31_spill] sm:$0xff] %v2289_v46  ;;  %v289_v59 = vmax.f32 %v1971_v22, %v2151_v54  ;;  %v291_v22 = vmax.f32 %v1979_v24, %v2161_v57 }
 0x16c   : > { %1048 = vrot.lane.b32.xlu1 %v2279_v45, %s1725_s20 }
 0x16d   : > { %v2291_v41 = vpop.permute.xlu0 %437  ;;  %v321_v45 = vmax.f32 %v289_v59, %v302_v5  ;;  %v323_v5 = vmax.f32 %v291_v22, %v2201_v7  ;;  %v1726_v7 = vmov 1983009808  }
 0x16e   : > { %v2297_v37 = vpop.permute.xlu1 %439 }
 0x16f   : > { %1046 = vrot.lane.b32.xlu0 %v2233_v17, %s1725_s20  ;;  %2980 = vst [vmem:[#allocation32_spill] sm:$0xff] %v2297_v37  ;;  %v285_v17 = vmax.f32 %v1925_v16, %v2135_v50  ;;  %v287_v37 = vmax.f32 %v1941_v18, %v2143_v52  ;;  %v286_v16 = vmax.f32 %v1951_v20, %v2141_v51 }
 0x170   : > { %1044 = vrot.lane.b32.xlu1 %v2245_v42, %s1725_s20  ;;  %v292_v51 = vmax.f32 %v1985_v25, %v2171_v60 }
 0x171   : > { %v2299_v35 = vpop.permute.xlu0 %441  ;;  %v317_v54 = vmax.f32 %v285_v17, %v2173_v61  ;;  %v319_v50 = vmax.f32 %v287_v37, %v2185_v2  ;;  %v288_v37 = vmax.f32 %v1969_v21, %v2149_v53 }
 0x172   : > { %v2307_v46 = vpop.permute.xlu1 %443  ;;  %v324_v21 = vmax.f32 %v292_v51, %v2209_v9 }
 0x173   : > { %1054 = vrot.lane.b32.xlu0 %v2243_v43, %s1725_s20  ;;  %v290_v43 = vmax.f32 %v1977_v23, %v2159_v56  ;;  %v337_v23 = vmax.f32 %v321_v45, %v2019_v30  ;;  %v318_v56 = vmax.f32 %v286_v16, %v2183_v0  ;;  %v333_v24 = vmax.f32 %v317_v54, %v2003_v26 }
 0x174   : > { %1052 = vrot.lane.b32.xlu1 %v2257_v63, %s1725_s20  ;;  %v339_v0 = vmax.f32 %v323_v5, %v2027_v32  ;;  %v320_v2 = vmax.f32 %v288_v37, %v2193_v4 }
 0x175   : > { %v446_v49 = vpop.permute.xlu0 %445  ;;  %v322_v59 = vmax.f32 %v290_v43, %v2199_v6  ;;  %v377_v20 = vmax.f32 %v337_v23, %v358_v15  ;;  %v335_v43 = vmax.f32 %v319_v50, %v2011_v28  ;;  %v373_v30 = vmax.f32 %v333_v24, %v2211_v10  ;;  %v2983_v23 = vld [vmem:[#allocation7_spill] sm:$0xff] }
 0x176   : > { %v2325_v18 = vpop.permute.xlu1 %447  ;;  %v334_v53 = vmax.f32 %v318_v56, %v2009_v27  ;;  %v379_v60 = vmax.f32 %v339_v0, %v2237_v1  ;;  %v506_v15 = vlaneseq  ;;  %v336_v17 = vmax.f32 %v320_v2, %v2017_v29  ;;  %v2984_v37 = vld [vmem:[#allocation32_spill] sm:$0xff] }
 0x177   : > { %1058 = vrot.lane.b32.xlu0 %v2255_v11, %s1725_s20  ;;  %v338_v45 = vmax.f32 %v322_v59, %v2025_v31  ;;  %v409_v26 = vmax.f32 %v377_v20, %v2273_v48  ;;  %v375_v25 = vmax.f32 %v335_v43, %v2221_v13  ;;  %v405_v6 = vmax.f32 %v373_v30, %v2249_v8  ;;  %v2981_v59 = vld [vmem:[#allocation29_spill] sm:$0xff]  ;;  %v2986_v2 = vld [vmem:[#allocation8_spill] sm:$0xff] }
 0x178   : > { %1056 = vrot.lane.b32.xlu1 %v2269_v55, %s1725_s20  ;;  %v504_v31 = vunpack.c.l.s4 %v1726_v7  ;;  %v374_v32 = vmax.f32 %v334_v53, %v2219_v12  ;;  %v411_v27 = vmax.f32 %v379_v60, %v2283_v44  ;;  %v340_v1 = vmax.f32 %v324_v21, %v2033_v33  ;;  %v2987_v53 = vld [vmem:[#allocation9_spill] sm:$0xff] }
 0x179   : > { %v2327_v52 = vpop.permute.xlu0 %449  ;;  %v378_v28 = vmax.f32 %v338_v45, %v2235_v19  ;;  %v407_v48 = vmax.f32 %v375_v25, %v2261_v58  ;;  %v425_v13 = vmax.f32 %v409_v26, %v2067_v38  ;;  %v421_v19 = vmax.f32 %v405_v6, %v2051_v34 }
 0x17a   : > { %v2341_v57 = vpop.permute.xlu1 %451  ;;  %v406_v8 = vmax.f32 %v374_v32, %v2259_v62  ;;  %v505_v22 = vunpack.c.0.s8 %v504_v31  ;;  %v376_v58 = vmax.f32 %v336_v17, %v2227_v14  ;;  %v380_v54 = vmax.f32 %v340_v1, %v2247_v3 }
 0x17b   : > { %v410_v9 = vmax.f32 %v378_v28, %v2281_v47  ;;  %v465_v12 = vmax.f32 %v425_v13, %v446_v49  ;;  %v423_v47 = vmax.f32 %v407_v48, %v2059_v36  ;;  %v507_v44 = vshrl.u32 %v506_v15, 7  ;;  %v2982_v49 = vld [vmem:[#allocation31_spill] sm:$0xff]  ;;  %v2988_v15 = vld [vmem:[#allocation14_spill] sm:$0xff] }
 0x17c   : > { %v461_v38 = vmax.f32 %v421_v19, %v2291_v41  ;;  %v427_v33 = vmax.f32 %v411_v27, %v2075_v40  ;;  %v408_v34 = vmax.f32 %v376_v58, %v2981_v59  ;;  %v412_v5 = vmax.f32 %v380_v54, %v2982_v49 }
 0x17d   : > { %v470_v61 = vpop.permute.xlu0 %469  ;;  %v426_v29 = vmax.f32 %v410_v9, %v2073_v39  ;;  %v422_v14 = vmax.f32 %v406_v8, %v2983_v23  ;;  %v1727_v56 = vmov 1934713408   ;;  %v463_v36 = vmax.f32 %v423_v47, %v2299_v35  ;;  %v2990_v47 = vld [vmem:[#allocation12_spill] sm:$0xff]  ;;  %v2992_v23 = vld [vmem:[#allocation13_spill] sm:$0xff] }
 0x17e   : > { %v472_v10 = vpop.permute.xlu1 %471  ;;  %v536_v3 = vunpack.c.l.s4 %v1727_v56  ;;  %v467_v20 = vmax.f32 %v427_v33, %v2327_v52  ;;  %v493_v41 = vmax.f32 %v461_v38, %v470_v61  ;;  %v2376_v51 = vsub.s32 %v505_v22, %v507_v44  ;;  %v2991_v33 = vld [vmem:[#allocation15_spill] sm:$0xff] }
 0x17f   : > { %v466_v24 = vmax.f32 %v426_v29, %v2325_v18  ;;  %v462_v39 = vmax.f32 %v422_v14, %v2984_v37  ;;  %v424_v21 = vmax.f32 %v408_v34, %v2986_v2  ;;  %v428_v25 = vmax.f32 %v412_v5, %v2987_v53 }
 0x180   : > { %2985 = vst [vmem:[#allocation29_spill] sm:$0xff] %v2376_v51  ;;  %v537_v35 = vunpack.c.0.s8 %v536_v3  ;;  %v731_v9 = vsub.f32 0.0, %v2988_v15  ;;  %v732_v14 = vadd.f32 %v2991_v33, %v2992_v23  ;;  %v2993_v3 = vld [vmem:[#allocation16_spill] sm:$0xff] }
 0x181   : > { %v474_v4 = vpop.permute.xlu0 %473  ;;  %v494_v28 = vmax.f32 %v462_v39, %v472_v10  ;;  %v464_v52 = vmax.f32 %v424_v21, %v2307_v46  ;;  %v468_v61 = vmax.f32 %v428_v25, %v2341_v57 }
 0x182   : > { %v476_v16 = vpop.permute.xlu1 %475  ;;  %v495_v30 = vmax.f32 %v463_v36, %v474_v4  ;;  %v2389_v10 = vsub.s32 %v537_v35, %v507_v44 }
 0x183   : > { %v496_v27 = vmax.f32 %v464_v52, %v476_v16  ;;  %v733_v16 = vadd.f32 %v2988_v15, %v2990_v47 }
 0x184   : > { %2989 = vst [vmem:[#allocation31_spill] sm:$0xff] %v2389_v10 }
 0x185   : > { %v478_v50 = vpop.permute.xlu0 %477  ;;  %v735_v36 = vadd.f32 %v733_v16, %v2993_v3 }
 0x186   : > { %v497_v62 = vmax.f32 %v465_v12, %v478_v50  ;;  %v480_v40 = vpop.permute.xlu1 %479 }
 0x187   : > { %v498_v0 = vmax.f32 %v466_v24, %v480_v40 }
 0x188   : > { %v501_v45 = vcombine.low %v493_v41, %v497_v62  ;;  %v502_v6 = vcombine.high %v493_v41, %v497_v62  ;;  %v730_v62 = vsub.f32 0.0, %v2991_v33 }
 0x189   : > { %v482_v43 = vpop.permute.xlu0 %481  ;;  %v569_v48 = vcombine.low %v494_v28, %v498_v0  ;;  %v570_v1 = vcombine.high %v494_v28, %v498_v0  ;;  %v2994_v0 = vld [vmem:[#allocation17_spill] sm:$0xff] }
 0x18a   : > { %v499_v26 = vmax.f32 %v467_v20, %v482_v43  ;;  %v484_v7 = vpop.permute.xlu1 %483  ;;  %v2385_v32 = vrot.slane %v501_v45, %v2376_v51  ;;  %v516_v17 = vrot.slane %v502_v6, %v2376_v51 }
 0x18b   : > { %v500_v46 = vmax.f32 %v468_v61, %v484_v7  ;;  %v577_v58 = vrot.slane %v569_v48, %v2376_v51  ;;  %v584_v59 = vrot.slane %v570_v1, %v2376_v51 }
 0x18c   : > { %v517_v18 = vcombine.low %v495_v30, %v499_v26  ;;  %v518_v60 = vcombine.high %v495_v30, %v499_v26  ;;  %v734_v26 = vadd.f32 %v732_v14, %v2994_v0 }
 0x18d   : > { %v2382_v31 = vpop.permute.xlu0 %754  ;;  %v585_v8 = vcombine.low %v496_v27, %v500_v46  ;;  %v586_v19 = vcombine.high %v496_v27, %v500_v46 }
 0x18e   : > { %v525_v4 = vrot.slane %v517_v18, %v2376_v51  ;;  %v532_v13 = vrot.slane %v518_v60, %v2376_v51  ;;  %v2394_v12 = vpop.permute.xlu1 %752  ;;  %v2400_v54 = vsub.f32 %v731_v9, %v2382_v31 }
 0x18f   : > { %v593_v50 = vrot.slane %v585_v8, %v2376_v51  ;;  %v600_v38 = vrot.slane %v586_v19, %v2376_v51  ;;  %v786_v40 = vsub.f32 %v730_v62, %v2394_v12 }
 0x190   : > { %v534_v57 = vcombine.high %v2385_v32, %v525_v4  ;;  %v549_v44 = vcombine.low %v516_v17, %v532_v13  ;;  %v550_v56 = vcombine.high %v516_v17, %v532_v13  ;;  %v533_v43 = vcombine.low %v2385_v32, %v525_v4 }
 0x191   : > { %v2396_v22 = vpop.permute.xlu0 %746  ;;  %v602_v34 = vcombine.high %v577_v58, %v593_v50  ;;  %v601_v20 = vcombine.low %v577_v58, %v593_v50  ;;  %v617_v41 = vcombine.low %v584_v59, %v600_v38  ;;  %v618_v28 = vcombine.high %v584_v59, %v600_v38 }
 0x192   : > { %v2407_v29 = vrot.slane %v534_v57, %v2389_v10  ;;  %v2413_v49 = vpop.permute.xlu1 %744  ;;  %v557_v39 = vrot.slane %v549_v44, %v2389_v10  ;;  %v777_v2 = vadd.f32 %v2396_v22, %v731_v9  ;;  %v564_v60 = vrot.slane %v550_v56, %v2389_v10 }
 0x193   : > { %v616_v37 = vrot.slane %v602_v34, %v2389_v10  ;;  %v2429_v35 = vrot.slane %v601_v20, %v2389_v10  ;;  %v2432_v18 = vrot.slane %v617_v41, %v2389_v10  ;;  %v2450_v27 = vrot.slane %v618_v28, %v2389_v10 }
 0x194   : > { %642 = vrot.lane.b32.xlu1 %v2407_v29, %s1728_s21  ;;  %v2999_v13 = vmov 0.0   ;;  %v776_v57 = vadd.f32 %v2413_v49, %v730_v62 }
 0x195   : > { %v795_v5 = vpop.permute.xlu0 %794  ;;  %670 = vrot.lane.b32.xlu0 %v616_v37, %s1728_s21  ;;  %2995 = vst [vmem:[#allocation7_spill] sm:$0xff] %v2429_v35  ;;  %2996 = vst [vmem:[#allocation32_spill] sm:$0xff] %v2432_v18  ;;  %v633_v46 = vcombine.high %v2429_v35, %v2999_v13  ;;  %v634_v50 = vcombine.high %v616_v37, %v2999_v13  ;;  %v566_v56 = vcombine.high %v2407_v29, %v2999_v13 }
 0x196   : > { %v831_v24 = vsub.f32 %v2400_v54, %v795_v5  ;;  %v793_v30 = vpop.permute.xlu1 %792  ;;  %2998 = vst [vmem:[#allocation9_spill] sm:$0xff] %v2450_v27  ;;  %v568_v28 = vcombine.high %v564_v60, %v2999_v13 }
 0x197   : > { %v830_v25 = vsub.f32 %v786_v40, %v793_v30 }
 0x198   : > { %650 = vrot.lane.b32.xlu1 %v557_v39, %s1729_s22 }
 0x199   : > { %v751_v45 = vpop.permute.xlu0 %750  ;;  %678 = vrot.lane.b32.xlu0 %v2432_v18, %s1729_s22  ;;  %v3009_v18 = vld [vmem:[#allocation10_spill] sm:$0xff] }
 0x19a   : > { %v771_v21 = vadd.f32 %v751_v45, %v2988_v15  ;;  %v781_v53 = vsub.f32 %v735_v36, %v751_v45  ;;  %v749_v6 = vpop.permute.xlu1 %748  ;;  %v2446_v15 = vrot.slane %v533_v43, %v2389_v10  ;;  %v567_v43 = vcombine.high %v557_v39, %v2999_v13 }
 0x19b   : > { %v770_v32 = vadd.f32 %v749_v6, %v2991_v33  ;;  %v780_v48 = vsub.f32 %v734_v26, %v749_v6 }
 0x19c   : > { %v783_v52 = vadd.f32 %v781_v53, %v2382_v31  ;;  %v2436_v61 = vadd.f32 %v795_v5, %v771_v21  ;;  %658 = vrot.lane.b32.xlu1 %v564_v60, %s1730_s23  ;;  %2997 = vst [vmem:[#allocation8_spill] sm:$0xff] %v2446_v15  ;;  %v565_v38 = vcombine.high %v2446_v15, %v2999_v13  ;;  %v3010_v13 = vld [vmem:[#allocation11_spill] sm:$0xff] }
 0x19d   : > { %v2441_v7 = vpop.permute.xlu0 %758  ;;  %v782_v17 = vadd.f32 %v780_v48, %v2394_v12  ;;  %v2456_v1 = vadd.f32 %v793_v30, %v770_v32  ;;  %686 = vrot.lane.b32.xlu0 %v2450_v27, %s1730_s23 }
 0x19e   : > { %v779_v4 = vadd.f32 %v777_v2, %v2441_v7  ;;  %v785_v9 = vsub.f32 %v783_v52, %v2441_v7  ;;  %v2461_v19 = vpop.permute.xlu1 %756 }
 0x19f   : > { %v778_v54 = vadd.f32 %v776_v57, %v2461_v19  ;;  %v784_v16 = vsub.f32 %v782_v17, %v2461_v19  ;;  %v3003_v17 = vld [vmem:[#allocation21_spill] sm:$0xff]  ;;  %v774_v10 = vadd.f32 %v2461_v19, %v2994_v0 }
 0x1a0   : > { %v821_v8 = vadd.f32 %v795_v5, %v779_v4  ;;  %666 = vrot.lane.b32.xlu1 %v633_v46, %s1731_s24  ;;  %v3002_v46 = vld [vmem:[#allocation19_spill] sm:$0xff] }
 0x1a1   : > { %v2463_v58 = vpop.permute.xlu0 %798  ;;  %v820_v33 = vadd.f32 %v793_v30, %v778_v54  ;;  %638 = vrot.lane.b32.xlu0 %v565_v38, %s1731_s24 }
 0x1a2   : > { %v833_v44 = vsub.f32 %v831_v24, %v2463_v58  ;;  %v2473_v62 = vpop.permute.xlu1 %796 }
 0x1a3   : > { %v832_v34 = vsub.f32 %v830_v25, %v2473_v62 }
 0x1a4   : > { %674 = vrot.lane.b32.xlu1 %v634_v50, %s1732_s25 }
 0x1a5   : > { %v2475_v59 = vpop.permute.xlu0 %790  ;;  %646 = vrot.lane.b32.xlu0 %v566_v56, %s1732_s25  ;;  %v3005_v56 = vld [vmem:[#allocation24_spill] sm:$0xff] }
 0x1a6   : > { %v825_v14 = vsub.f32 %v2990_v47, %v2475_v59  ;;  %v2483_v24 = vpop.permute.xlu1 %788 }
 0x1a7   : > { %v824_v41 = vsub.f32 %v2992_v23, %v2483_v24 }
 0x1a8   : > { %v827_v36 = vsub.f32 %v825_v14, %v795_v5  ;;  %v3000_v5 = vld [vmem:[#allocation18_spill] sm:$0xff] }
 0x1a9   : > { %v2485_v20 = vpop.permute.xlu0 %802  ;;  %v826_v45 = vsub.f32 %v824_v41, %v793_v30  ;;  %654 = vrot.lane.b32.xlu0 %v567_v43, %s1733_s26  ;;  %v861_v26 = vadd.f32 %v3000_v5, %v833_v44  ;;  %v857_v39 = vsub.f32 %v785_v9, %v3000_v5  ;;  %v3001_v30 = vld [vmem:[#allocation20_spill] sm:$0xff]  ;;  %v3006_v43 = vld [vmem:[#allocation23_spill] sm:$0xff] }
 0x1aa   : > { %v823_v37 = vadd.f32 %v821_v8, %v2485_v20  ;;  %v829_v40 = vadd.f32 %v827_v36, %v2485_v20  ;;  %v2493_v29 = vpop.permute.xlu1 %800  ;;  %v860_v52 = vadd.f32 %v3001_v30, %v832_v34  ;;  %v856_v60 = vsub.f32 %v784_v16, %v3001_v30 }
 0x1ab   : > { %v822_v21 = vadd.f32 %v820_v33, %v2493_v29  ;;  %v828_v53 = vadd.f32 %v826_v45, %v2493_v29  ;;  %v859_v8 = vadd.f32 %v857_v39, %v3003_v17  ;;  %v3004_v33 = vld [vmem:[#allocation22_spill] sm:$0xff] }
 0x1ac   : > { %v851_v57 = vsub.f32 %v823_v37, %v3002_v46  ;;  %v853_v36 = vsub.f32 %v829_v40, %v3005_v56  ;;  %v858_v45 = vadd.f32 %v856_v60, %v3006_v43 }
 0x1ad   : > { %v2496_v2 = vpop.permute.xlu0 %876  ;;  %662 = vrot.lane.b32.xlu0 %v568_v28, %s1734_s27  ;;  %v850_v34 = vsub.f32 %v822_v21, %v3004_v33  ;;  %v3007_v28 = vld [vmem:[#allocation25_spill] sm:$0xff] }
 0x1ae   : > { %v911_v25 = vadd.f32 %v2496_v2, %v861_v26  ;;  %v2505_v6 = vpop.permute.xlu1 %874  ;;  %v852_v39 = vsub.f32 %v828_v53, %v3007_v28  ;;  %v769_v53 = vadd.f32 %v2396_v22, %v2990_v47  ;;  %v818_v47 = vadd.f32 %v2493_v29, %v774_v10 }
 0x1af   : > { %v910_v48 = vadd.f32 %v2505_v6, %v860_v52 }
 0x1b0   : > { %v854_v60 = vadd.f32 %v852_v39, %v3004_v33  ;;  %v775_v39 = vadd.f32 %v2441_v7, %v2993_v3 }
 0x1b1   : > { %v2507_v32 = vpop.permute.xlu0 %922 }
 0x1b2   : > { %v953_v4 = vadd.f32 %v2507_v32, %v911_v25  ;;  %v2514_v9 = vpop.permute.xlu1 %920  ;;  %v819_v51 = vadd.f32 %v2485_v20, %v775_v39 }
 0x1b3   : > { %v952_v44 = vadd.f32 %v2514_v9, %v910_v48  ;;  %v855_v48 = vadd.f32 %v853_v36, %v3002_v46  ;;  %v768_v36 = vadd.f32 %v2413_v49, %v2992_v23 }
 0x1b5   : > { %v885_v54 = vpop.permute.xlu0 %884  ;;  %v812_v22 = vadd.f32 %v2483_v24, %v768_v36  ;;  %v3011_v24 = vld [vmem:[#allocation26_spill] sm:$0xff] }
 0x1b6   : > { %v903_v50 = vsub.f32 %v851_v57, %v885_v54  ;;  %v909_v38 = vadd.f32 %v885_v54, %v859_v8  ;;  %v883_v41 = vpop.permute.xlu1 %882 }
 0x1b7   : > { %v902_v16 = vsub.f32 %v850_v34, %v883_v41  ;;  %v908_v25 = vadd.f32 %v883_v41, %v858_v45 }
 0x1b8   : > { %v2519_v14 = vadd.f32 %v2507_v32, %v903_v50 }
 0x1b9   : > { %v2522_v37 = vpop.permute.xlu0 %926  ;;  %v2529_v52 = vadd.f32 %v2514_v9, %v902_v16 }
 0x1ba   : > { %v2531_v21 = vpop.permute.xlu1 %924  ;;  %v955_v49 = vadd.f32 %v953_v4, %v2522_v37  ;;  %v842_v4 = vadd.f32 %v3007_v28, %v812_v22 }
 0x1bb   : > { %v954_v23 = vadd.f32 %v952_v44, %v2531_v21 }
 0x1bc   : > { %v983_v10 = vadd.f32 %v3011_v24, %v955_v49 }
 0x1bd   : > { %v881_v40 = vpop.permute.xlu0 %880 }
 0x1be   : > { %v905_v8 = vsub.f32 %v855_v48, %v881_v40  ;;  %v879_v34 = vpop.permute.xlu1 %878 }
 0x1bf   : > { %v904_v26 = vsub.f32 %v854_v60, %v879_v34  ;;  %v773_v60 = vadd.f32 %v2382_v31, %v3009_v18  ;;  %v849_v18 = vadd.f32 %v3003_v17, %v819_v51  ;;  %v982_v51 = vadd.f32 %v2245_v42, %v954_v23 }
 0x1c0   : > { %v2537_v50 = vadd.f32 %v905_v8, %v885_v54 }
 0x1c1   : > { %v915_v45 = vpop.permute.xlu0 %914  ;;  %v2541_v16 = vadd.f32 %v904_v26, %v883_v41  ;;  %v772_v26 = vadd.f32 %v2394_v12, %v3010_v13  ;;  %v817_v3 = vadd.f32 %v2463_v58, %v773_v60  ;;  %v813_v12 = vadd.f32 %v2475_v59, %v769_v53 }
 0x1c2   : > { %v913_v15 = vpop.permute.xlu1 %912  ;;  %v951_v0 = vsub.f32 %v909_v38, %v915_v45  ;;  %v848_v59 = vadd.f32 %v3006_v43, %v818_v47  ;;  %v901_v44 = vadd.f32 %v885_v54, %v849_v18  ;;  %v845_v38 = vadd.f32 %v3000_v5, %v2436_v61  ;;  %v3012_v61 = vld [vmem:[#allocation27_spill] sm:$0xff] }
 0x1c3   : > { %v816_v7 = vadd.f32 %v2473_v62, %v772_v26  ;;  %v847_v13 = vadd.f32 %v3002_v46, %v817_v3  ;;  %v950_v58 = vsub.f32 %v908_v25, %v913_v15  ;;  %v843_v29 = vadd.f32 %v3005_v56, %v813_v12 }
 0x1c4   : > { %v977_v46 = vsub.f32 %v951_v0, %v3011_v24  ;;  %v943_v43 = vadd.f32 %v2522_v37, %v901_v44  ;;  %v897_v54 = vadd.f32 %v2496_v2, %v845_v38  ;;  %v985_v5 = vsub.f32 %v983_v10, %v3012_v61  ;;  %v3014_v2 = vld [vmem:[#allocation30_spill] sm:$0xff] }
 0x1c5   : > { %v873_v35 = vpop.permute.xlu0 %872  ;;  %v846_v19 = vadd.f32 %v3004_v33, %v816_v7  ;;  %v899_v17 = vadd.f32 %v881_v40, %v847_v13  ;;  %v900_v33 = vadd.f32 %v883_v41, %v848_v59  ;;  %v976_v36 = vsub.f32 %v950_v58, %v2245_v42  ;;  %v3013_v41 = vld [vmem:[#allocation28_spill] sm:$0xff] }
 0x1c6   : > { %v871_v27 = vpop.permute.xlu1 %870  ;;  %v895_v53 = vadd.f32 %v873_v35, %v843_v29  ;;  %v844_v40 = vadd.f32 %v3001_v30, %v2456_v1  ;;  %v984_v26 = vsub.f32 %v982_v51, %v2257_v63  ;;  %v3015_v1 = vsub.f32 %v2519_v14, %v2522_v37 }
 0x1c7   : > { %v898_v25 = vadd.f32 %v879_v34, %v846_v19  ;;  %v894_v39 = vadd.f32 %v871_v27, %v842_v4  ;;  %v942_v60 = vadd.f32 %v2531_v21, %v900_v33  ;;  %v941_v35 = vadd.f32 %v2507_v32, %v899_v17 }
 0x1c8   : > { %v979_v34 = vsub.f32 %v977_v46, %v3013_v41  ;;  %v896_v27 = vadd.f32 %v2505_v6, %v844_v40  ;;  %v937_v7 = vadd.f32 %v915_v45, %v895_v53  ;;  %v978_v22 = vsub.f32 %v976_v36, %v3014_v2 }
 0x1c9   : > { %v919_v57 = vpop.permute.xlu0 %918  ;;  %v940_v3 = vadd.f32 %v2514_v9, %v898_v25  ;;  %v936_v47 = vadd.f32 %v913_v15, %v894_v39  ;;  %v973_v30 = vadd.f32 %v3011_v24, %v3015_v1  ;;  %v971_v23 = vadd.f32 %v2255_v11, %v943_v43 }
 0x1ca   : > { %v917_v48 = vpop.permute.xlu1 %916  ;;  %v939_v12 = vadd.f32 %v919_v57, %v897_v54  ;;  %v987_v18 = vsub.f32 %v985_v5, %v2255_v11  ;;  %v3016_v6 = vsub.f32 %v2529_v52, %v2531_v21  ;;  %v970_v57 = vadd.f32 %v2269_v55, %v942_v60 }
 0x1cb   : > { %v938_v0 = vadd.f32 %v917_v48, %v896_v27  ;;  %v981_v15 = vsub.f32 %v979_v34, %v2255_v11  ;;  %v986_v14 = vsub.f32 %v984_v26, %v2269_v55  ;;  %v3017_v45 = vsub.f32 %v2537_v50, %v2522_v37 }
 0x1cc   : > { %v972_v9 = vadd.f32 %v2245_v42, %v3016_v6  ;;  %v969_v48 = vadd.f32 %v3012_v61, %v941_v35  ;;  %v967_v19 = vadd.f32 %v3013_v41, %v939_v12  ;;  %v3018_v52 = vsub.f32 %v2541_v16, %v2531_v21 }
 0x1cd   : > { %v2547_v8 = vpop.permute.xlu0 %998  ;;  %v975_v13 = vadd.f32 %v3011_v24, %v3017_v45  ;;  %v965_v59 = vadd.f32 %v3011_v24, %v937_v7  ;;  %v968_v11 = vadd.f32 %v2257_v63, %v940_v3  ;;  %v980_v37 = vsub.f32 %v978_v22, %v2269_v55 }
 0x1ce   : > { %3008 = vst [vmem:[#allocation14_spill] sm:$0xff] %v2547_v8  ;;  %v2562_v8 = vpop.permute.xlu1 %996  ;;  %v974_v58 = vadd.f32 %v2245_v42, %v3018_v52  ;;  %v964_v51 = vadd.f32 %v2245_v42, %v936_v47  ;;  %v966_v17 = vadd.f32 %v3014_v2, %v938_v0 }
 0x1cf   : > { %v1038_v21 = vadd.f32 %v2562_v8, %v986_v14  ;;  %v1034_v63 = vadd.f32 %v2562_v8, %v980_v37 }
 0x1d0   : > { %v1020_v38 = vadd.f32 %v2562_v8, %v964_v51 }
 0x1d1   : > { %v2564_v31 = vpop.permute.xlu0 %1006 }
 0x1d2   : > { %v2574_v62 = vpop.permute.xlu1 %1004  ;;  %v1029_v16 = vsub.f32 %v973_v30, %v2564_v31  ;;  %v1025_v55 = vadd.f32 %v2564_v31, %v969_v48 }
 0x1d3   : > { %v1028_v33 = vsub.f32 %v972_v9, %v2574_v62  ;;  %v1040_v42 = vsub.f32 %v1038_v21, %v2574_v62  ;;  %v1024_v8 = vadd.f32 %v2574_v62, %v968_v11 }
 0x1d5   : > { %v2576_v20 = vpop.permute.xlu0 %1010  ;;  %v3019_v10 = vld [vmem:[#allocation14_spill] sm:$0xff] }
 0x1d6   : > { %v2588_v56 = vpop.permute.xlu1 %1008  ;;  %v1035_v29 = vadd.f32 %v3019_v10, %v981_v15  ;;  %v1039_v4 = vadd.f32 %v3019_v10, %v987_v18  ;;  %v1021_v24 = vadd.f32 %v3019_v10, %v965_v59  ;;  %v1031_v25 = vsub.f32 %v1029_v16, %v2576_v20 }
 0x1d7   : > { %v1033_v54 = vadd.f32 %v2576_v20, %v975_v13  ;;  %v1030_v34 = vsub.f32 %v1028_v33, %v2588_v56  ;;  %v1032_v26 = vadd.f32 %v2588_v56, %v974_v58  ;;  %v1026_v7 = vadd.f32 %v2588_v56, %v970_v57 }
 0x1d8   : > { %v1041_v46 = vsub.f32 %v1039_v4, %v2564_v31  ;;  %v1027_v31 = vadd.f32 %v2576_v20, %v971_v23  ;;  %v1042_v57 = vsub.f32 %v1040_v42, %v2588_v56 }
 0x1d9   : > { %v2590_v28 = vpop.permute.xlu0 %1002 }
 0x1da   : > { %v1001_v49 = vpop.permute.xlu1 %1000  ;;  %v1023_v43 = vadd.f32 %v2590_v28, %v967_v19  ;;  %v1037_v36 = vsub.f32 %v1035_v29, %v2590_v28  ;;  %v1043_v5 = vsub.f32 %v1041_v46, %v2576_v20 }
 0x1db   : > { %v1036_v39 = vsub.f32 %v1034_v63, %v1001_v49  ;;  %v1022_v2 = vadd.f32 %v1001_v49, %v966_v17  ;;  %v3020_v17 = vld [vmem:[#allocation29_spill] sm:$0xff] }
 0x1dc   : > { %v1305_v12 = vmax.f32 %v1037_v36, 0.0 }
 0x1dd   : > { %v1051_v32 = vpop.permute.xlu0 %1050  ;;  %v2654_v22 = vmax.f32 %v1036_v39, 0.0 }
 0x1de   : > { %v2631_v50 = vpop.permute.xlu1 %1048  ;;  %v1071_v35 = vadd.f32 %v1051_v32, %v1023_v43  ;;  %v1081_v41 = vadd.f32 %v1051_v32, %v1033_v54  ;;  %v1077_v62 = vadd.f32 %v1051_v32, %v1031_v25 }
 0x1df   : > { %v1070_v49 = vadd.f32 %v2631_v50, %v1022_v2  ;;  %v1076_v48 = vadd.f32 %v2631_v50, %v1030_v34  ;;  %v1080_v51 = vadd.f32 %v2631_v50, %v1032_v26 }
 0x1e0   : > { %v1087_v18 = vmul.f32 0.11111111, %v1071_v35  ;;  %v1303_v6 = vmax.f32 %v1081_v41, 0.0 }
 0x1e1   : > { %v1047_v44 = vpop.permute.xlu0 %1046  ;;  %v1302_v39 = vmax.f32 %v1080_v51, 0.0 }
 0x1e2   : > { %v1069_v53 = vadd.f32 %v1047_v44, %v1021_v24  ;;  %v1045_v40 = vpop.permute.xlu1 %1044  ;;  %v1086_v24 = vmul.f32 0.11111111, %v1070_v49 }
 0x1e3   : > { %v1068_v28 = vadd.f32 %v1045_v40, %v1020_v38 }
 0x1e4   : > { %v1085_v27 = vmul.f32 0.11111111, %v1069_v53 }
 0x1e5   : > { %v1055_v60 = vpop.permute.xlu0 %1054  ;;  %v1084_v14 = vmul.f32 0.11111111, %v1068_v28 }
 0x1e6   : > { %v1073_v61 = vadd.f32 %v1055_v60, %v1025_v55  ;;  %v1053_v47 = vpop.permute.xlu1 %1052 }
 0x1e7   : > { %v1072_v23 = vadd.f32 %v1053_v47, %v1024_v8 }
 0x1e8   : > { %v1089_v3 = vmul.f32 0.11111111, %v1073_v61 }
 0x1e9   : > { %v1059_v1 = vpop.permute.xlu0 %1058  ;;  %v1088_v45 = vmul.f32 0.11111111, %v1072_v23 }
 0x1ea   : > { %v1160_v30 = vcombine.low %v1085_v27, %v1089_v3  ;;  %v1161_v20 = vcombine.high %v1085_v27, %v1089_v3  ;;  %v1075_v0 = vadd.f32 %v1059_v1, %v1027_v31  ;;  %v1079_v9 = vsub.f32 %v1077_v62, %v1059_v1  ;;  %v1057_v44 = vpop.permute.xlu1 %1056  ;;  %v3021_v31 = vld [vmem:[#allocation31_spill] sm:$0xff] }
 0x1eb   : > { %v1083_v15 = vadd.f32 %v1059_v1, %v1043_v5  ;;  %v1092_v52 = vcombine.low %v1084_v14, %v1088_v45  ;;  %v1093_v58 = vcombine.high %v1084_v14, %v1088_v45  ;;  %v1074_v55 = vadd.f32 %v1057_v44, %v1026_v7 }
 0x1ec   : > { %v1091_v13 = vmul.f32 0.11111111, %v1075_v0  ;;  %v1301_v32 = vmax.f32 %v1079_v9, 0.0  ;;  %v2661_v21 = vrot.slane %v1160_v30, %v3020_v17  ;;  %v2670_v63 = vrot.slane %v1161_v20, %v3020_v17 }
 0x1ed   : > { %v1307_v19 = vmax.f32 %v1083_v15, 0.0  ;;  %v1078_v33 = vsub.f32 %v1076_v48, %v1057_v44  ;;  %v1082_v42 = vadd.f32 %v1057_v44, %v1042_v57  ;;  %v1090_v54 = vmul.f32 0.11111111, %v1074_v55 }
 0x1ee   : > { %v1176_v59 = vcombine.low %v1087_v18, %v1091_v13  ;;  %v1177_v11 = vcombine.high %v1087_v18, %v1091_v13  ;;  %v1376_v10 = vcombine.low %v1301_v32, %v1305_v12  ;;  %v1377_v29 = vcombine.high %v1301_v32, %v1305_v12 }
 0x1ef   : > { %v1392_v4 = vcombine.low %v1303_v6, %v1307_v19  ;;  %v1393_v37 = vcombine.high %v1303_v6, %v1307_v19  ;;  %v1300_v40 = vmax.f32 %v1078_v33, 0.0  ;;  %v1306_v60 = vmax.f32 %v1082_v42, 0.0 }
 0x1f0   : > { %v2664_v56 = vrot.slane %v1176_v59, %v3020_v17  ;;  %v2667_v16 = vrot.slane %v1177_v11, %v3020_v17  ;;  %v2673_v46 = vrot.slane %v1376_v10, %v3020_v17  ;;  %v1100_v61 = vrot.slane %v1092_v52, %v3020_v17  ;;  %v3023_v52 = vld [vmem:[#allocation32_spill] sm:$0xff] }
 0x1f1   : > { %v2676_v38 = vrot.slane %v1392_v4, %v3020_v17  ;;  %v1107_v8 = vrot.slane %v1093_v58, %v3020_v17  ;;  %v1108_v41 = vcombine.low %v1086_v24, %v1090_v54  ;;  %v1109_v34 = vcombine.high %v1086_v24, %v1090_v54  ;;  %v3024_v4 = vld [vmem:[#allocation9_spill] sm:$0xff] }
 0x1f2   : > { %v1192_v50 = vcombine.low %v2661_v21, %v2664_v56  ;;  %v1193_v53 = vcombine.high %v2661_v21, %v2664_v56  ;;  %v1208_v43 = vcombine.low %v2670_v63, %v2667_v16  ;;  %v1209_v36 = vcombine.high %v2670_v63, %v2667_v16  ;;  %v3025_v56 = vld [vmem:[#allocation7_spill] sm:$0xff] }
 0x1f3   : > { %v1408_v25 = vcombine.low %v2673_v46, %v2676_v38  ;;  %v1409_v35 = vcombine.high %v2673_v46, %v2676_v38  ;;  %v1308_v26 = vcombine.low %v1300_v40, %v2654_v22  ;;  %v1309_v27 = vcombine.high %v1300_v40, %v2654_v22 }
 0x1f4   : > { %v2691_v5 = vrot.slane %v1193_v53, %v3021_v31  ;;  %v2698_v28 = vrot.slane %v1377_v29, %v3020_v17  ;;  %v2701_v3 = vrot.slane %v1393_v37, %v3020_v17  ;;  %v1324_v7 = vcombine.low %v1302_v39, %v1306_v60 }
 0x1f5   : > { %v1325_v12 = vcombine.high %v1302_v39, %v1306_v60  ;;  %v1116_v2 = vrot.slane %v1108_v41, %v3020_v17  ;;  %v1123_v62 = vrot.slane %v1109_v34, %v3020_v17  ;;  %v2708_v47 = vrot.slane %v1308_v26, %v3020_v17 }
 0x1f6   : > { %1261 = vrot.lane.b32.xlu0 %v2691_v5, %s1728_s21  ;;  %v2711_v22 = vrot.slane %v1309_v27, %v3020_v17  ;;  %v2714_v1 = vrot.slane %v1324_v7, %v3020_v17  ;;  %v1216_v20 = vrot.slane %v1208_v43, %v3021_v31  ;;  %v1424_v15 = vcombine.low %v2698_v28, %v2701_v3 }
 0x1f7   : > { %v2717_v30 = vrot.slane %v1325_v12, %v3020_v17  ;;  %v1124_v23 = vcombine.low %v1100_v61, %v1116_v2  ;;  %v1125_v0 = vcombine.high %v1100_v61, %v1116_v2  ;;  %v1141_v18 = vcombine.high %v1107_v8, %v1123_v62 }
 0x1f8   : > { %v1140_v6 = vcombine.low %v1107_v8, %v1123_v62  ;;  %v1340_v9 = vcombine.low %v2708_v47, %v2714_v1  ;;  %v1341_v49 = vcombine.high %v2708_v47, %v2714_v1  ;;  %v1425_v32 = vcombine.high %v2698_v28, %v2701_v3 }
 0x1f9   : > { %v1357_v14 = vcombine.high %v2711_v22, %v2717_v30  ;;  %v1139_v45 = vrot.slane %v1125_v0, %v3021_v31  ;;  %v1155_v13 = vrot.slane %v1141_v18, %v3021_v31  ;;  %v2730_v57 = vrot.slane %v1124_v23, %v3021_v31 }
 0x1fa   : > { %1269 = vrot.lane.b32.xlu0 %v1216_v20, %s1729_s22  ;;  %v1356_v48 = vcombine.low %v2711_v22, %v2717_v30  ;;  %v3022_v19 = vmov 0.0   ;;  %v1148_v11 = vrot.slane %v1140_v6, %v3021_v31  ;;  %v1223_v16 = vrot.slane %v1209_v36, %v3021_v31 }
 0x1fb   : > { %1233 = vrot.lane.b32.xlu1 %v1139_v45, %s1728_s21  ;;  %v635_v58 = vcombine.high %v3023_v52, %v3022_v19  ;;  %v1156_v59 = vcombine.high %v2730_v57, %v3022_v19  ;;  %v1157_v10 = vcombine.high %v1139_v45, %v3022_v19  ;;  %v636_v37 = vcombine.high %v3024_v4, %v3022_v19 }
 0x1fc   : > { %v1158_v44 = vcombine.high %v1148_v11, %v3022_v19  ;;  %v2760_v24 = vrot.slane %v1192_v50, %v3021_v31  ;;  %v1159_v63 = vcombine.high %v1155_v13, %v3022_v19  ;;  %v1423_v53 = vrot.slane %v1409_v35, %v3021_v31  ;;  %v3026_v35 = vld [vmem:[#allocation8_spill] sm:$0xff] }
 0x1fd   : > { %v1225_v36 = vcombine.high %v2691_v5, %v3022_v19  ;;  %v1432_v39 = vrot.slane %v1424_v15, %v3021_v31  ;;  %v1226_v8 = vcombine.high %v1216_v20, %v3022_v19  ;;  %v1371_v41 = vrot.slane %v1357_v14, %v3021_v31 }
 0x1fe   : > { %1249 = vrot.lane.b32.xlu0 %v1155_v13, %s1730_s23  ;;  %v1224_v42 = vcombine.high %v2760_v24, %v3022_v19  ;;  %v2786_v34 = vrot.slane %v1340_v9, %v3021_v31  ;;  %v1227_v12 = vcombine.high %v1223_v16, %v3022_v19  ;;  %v1355_v62 = vrot.slane %v1341_v49, %v3021_v31 }
 0x1ff   : > { %682 = vrot.lane.b32.xlu1 %v635_v58, %s1733_s26  ;;  %v1364_v0 = vrot.slane %v1356_v48, %v3021_v31  ;;  %v1439_v14 = vrot.slane %v1425_v32, %v3021_v31  ;;  %v2829_v45 = vrot.slane %v1408_v25, %v3021_v31  ;;  %v1375_v13 = vcombine.high %v1371_v41, %v3022_v19 }
 0x200   : > { %v1372_v47 = vcombine.high %v2786_v34, %v3022_v19  ;;  %v1373_v18 = vcombine.high %v1355_v62, %v3022_v19  ;;  %v1441_v28 = vcombine.high %v1423_v53, %v3022_v19  ;;  %v1442_v3 = vcombine.high %v1432_v39, %v3022_v19 }
 0x201   : > { %v1374_v15 = vcombine.high %v1364_v0, %v3022_v19  ;;  %v1440_v49 = vcombine.high %v2829_v45, %v3022_v19  ;;  %v1443_v46 = vcombine.high %v1439_v14, %v3022_v19 }
 0x202   : > { %1229 = vrot.lane.b32.xlu0 %v1156_v59, %s1731_s24 }
 0x203   : > { %1241 = vrot.lane.b32.xlu1 %v1148_v11, %s1729_s22 }
 0x206   : > { %v643_v29 = vpop.permute.xlu1 %642  ;;  %1237 = vrot.lane.b32.xlu0 %v1157_v10, %s1732_s25 }
 0x207   : > { %690 = vrot.lane.b32.xlu1 %v636_v37, %s1734_s27  ;;  %v671_v17 = vpop.permute.xlu0 %670 }
 0x20a   : > { %v651_v51 = vpop.permute.xlu1 %650  ;;  %1245 = vrot.lane.b32.xlu0 %v1158_v44, %s1733_s26 }
 0x20b   : > { %1277 = vrot.lane.b32.xlu1 %v1223_v16, %s1730_s23  ;;  %v679_v33 = vpop.permute.xlu0 %678 }
 0x20e   : > { %v659_v55 = vpop.permute.xlu1 %658  ;;  %1253 = vrot.lane.b32.xlu0 %v1159_v63, %s1734_s27 }
 0x20f   : > { %1257 = vrot.lane.b32.xlu1 %v1224_v42, %s1731_s24  ;;  %v2770_v21 = vpop.permute.xlu0 %686 }
 0x212   : > { %v667_v43 = vpop.permute.xlu1 %666  ;;  %1477 = vrot.lane.b32.xlu0 %v1423_v53, %s1728_s21 }
 0x213   : > { %v707_v50 = vsel %vm693_vm4, %v3025_v56, %v667_v43  ;;  %1265 = vrot.lane.b32.xlu1 %v1225_v36, %s1732_s25  ;;  %v639_v60 = vpop.permute.xlu0 %638 }
 0x214   : > { %v708_v40 = vsel %vm695_vm5, %v707_v50, %v671_v17  ;;  %v694_v5 = vsel %vm693_vm4, %v3026_v35, %v639_v60 }
 0x215   : > { %v696_v27 = vsel %vm695_vm5, %v694_v5, %v643_v29 }
 0x216   : > { %v675_v54 = vpop.permute.xlu1 %674  ;;  %1485 = vrot.lane.b32.xlu0 %v1432_v39, %s1729_s22 }
 0x217   : > { %v709_v61 = vsel %vm697_vm6, %v708_v40, %v675_v54  ;;  %1273 = vrot.lane.b32.xlu1 %v1226_v8, %s1733_s26  ;;  %v647_v7 = vpop.permute.xlu0 %646 }
 0x218   : > { %v710_v26 = vsel %vm699_vm7, %v709_v61, %v679_v33  ;;  %v698_v2 = vsel %vm697_vm6, %v696_v27, %v647_v7 }
 0x219   : > { %v700_v1 = vsel %vm699_vm7, %v698_v2, %v651_v51 }
 0x21a   : > { %1465 = vrot.lane.b32.xlu0 %v1371_v41, %s1730_s23 }
 0x21b   : > { %1281 = vrot.lane.b32.xlu1 %v1227_v12, %s1734_s27  ;;  %v655_v20 = vpop.permute.xlu0 %654 }
 0x21c   : > { %v702_v23 = vsel %vm701_vm8, %v700_v1, %v655_v20 }
 0x21d   : > { %v704_v6 = vsel %vm703_vm9, %v702_v23, %v659_v55 }
 0x21e   : > { %1445 = vrot.lane.b32.xlu0 %v1372_v47, %s1731_s24 }
 0x21f   : > { %1449 = vrot.lane.b32.xlu1 %v1355_v62, %s1728_s21  ;;  %v663_v9 = vpop.permute.xlu0 %662 }
 0x220   : > { %v706_v22 = vsel %vm705_vm10, %v704_v6, %v663_v9 }
 0x221   : > { %v716_v30 = vrot.slane %v706_v22, 4 }
 0x222   : > { %1453 = vrot.lane.b32.xlu0 %v1373_v18, %s1732_s25 }
 0x223   : > { %1457 = vrot.lane.b32.xlu1 %v1364_v0, %s1729_s22  ;;  %720 = vst [vmem:[%s2814_s2] sm:$0xf0] %v716_v30 }
 0x226   : > { %1461 = vrot.lane.b32.xlu0 %v1374_v15, %s1733_s26 }
 0x227   : > { %1493 = vrot.lane.b32.xlu1 %v1439_v14, %s1730_s23 }
 0x22a   : > { %1469 = vrot.lane.b32.xlu0 %v1375_v13, %s1734_s27 }
 0x22b   : > { %1473 = vrot.lane.b32.xlu1 %v1440_v49, %s1731_s24 }
 0x22f   : > { %1481 = vrot.lane.b32.xlu1 %v1441_v28, %s1732_s25 }
 0x233   : > { %1489 = vrot.lane.b32.xlu1 %v1442_v3, %s1733_s26 }
 0x237   : > { %1497 = vrot.lane.b32.xlu1 %v1443_v46, %s1734_s27 }
 0x268   : > { %v1262_v38 = vpop.permute.xlu0 %1261 }
 0x26c   : > { %v1270_v25 = vpop.permute.xlu0 %1269 }
 0x26d   : > { %v1234_v31 = vpop.permute.xlu1 %1233 }
 0x270   : > { %v1250_v48 = vpop.permute.xlu0 %1249 }
 0x271   : > { %v683_v32 = vpop.permute.xlu1 %682 }
 0x272   : > { %v711_v11 = vsel %vm701_vm8, %v710_v26, %v683_v32 }
 0x273   : > { %v712_v37 = vsel %vm703_vm9, %v711_v11, %v2770_v21 }
 0x274   : > { %v1230_v52 = vpop.permute.xlu0 %1229 }
 0x275   : > { %v1284_v58 = vsel %vm693_vm4, %v2730_v57, %v1230_v52  ;;  %v1242_v59 = vpop.permute.xlu1 %1241 }
 0x276   : > { %v1285_v10 = vsel %vm695_vm5, %v1284_v58, %v1234_v31 }
 0x278   : > { %v1238_v29 = vpop.permute.xlu0 %1237 }
 0x279   : > { %v1286_v19 = vsel %vm697_vm6, %v1285_v10, %v1238_v29  ;;  %v691_v4 = vpop.permute.xlu1 %690 }
 0x27a   : > { %v713_v44 = vsel %vm705_vm10, %v712_v37, %v691_v4  ;;  %v1287_v51 = vsel %vm699_vm7, %v1286_v19, %v1242_v59 }
 0x27b   : > { %v717_v16 = vrot.slane %v713_v44, 4 }
 0x27c   : > { %v1246_v17 = vpop.permute.xlu0 %1245 }
 0x27d   : > { %v1288_v57 = vsel %vm701_vm8, %v1287_v51, %v1246_v17  ;;  %721 = vst [vmem:[%s2814_s2 + $0x8] sm:$0xf0] %v717_v16  ;;  %v1278_v63 = vpop.permute.xlu1 %1277 }
 0x27e   : > { %v1289_v55 = vsel %vm703_vm9, %v1288_v57, %v1250_v48 }
 0x280   : > { %v1254_v33 = vpop.permute.xlu0 %1253 }
 0x281   : > { %v1290_v42 = vsel %vm705_vm10, %v1289_v55, %v1254_v33  ;;  %v1258_v53 = vpop.permute.xlu1 %1257 }
 0x282   : > { %1298 = vst [vmem:[%s2814_s2 + $0x10] sm:$0xf] %v1290_v42  ;;  %v1291_v43 = vsel %vm693_vm4, %v2760_v24, %v1258_v53 }
 0x283   : > { %v1292_v50 = vsel %vm695_vm5, %v1291_v43, %v1262_v38 }
 0x284   : > { %v1478_v21 = vpop.permute.xlu0 %1477 }
 0x285   : > { %v1266_v56 = vpop.permute.xlu1 %1265 }
 0x286   : > { %v1293_v36 = vsel %vm697_vm6, %v1292_v50, %v1266_v56 }
 0x287   : > { %v1294_v40 = vsel %vm699_vm7, %v1293_v36, %v1270_v25 }
 0x288   : > { %v1486_v39 = vpop.permute.xlu0 %1485 }
 0x289   : > { %v1274_v54 = vpop.permute.xlu1 %1273 }
 0x28a   : > { %v1295_v60 = vsel %vm701_vm8, %v1294_v40, %v1274_v54 }
 0x28b   : > { %v1296_v35 = vsel %vm703_vm9, %v1295_v60, %v1278_v63 }
 0x28c   : > { %v1466_v61 = vpop.permute.xlu0 %1465 }
 0x28d   : > { %v1282_v8 = vpop.permute.xlu1 %1281 }
 0x28e   : > { %v1297_v5 = vsel %vm705_vm10, %v1296_v35, %v1282_v8 }
 0x28f   : > { %1299 = vst [vmem:[%s2814_s2 + $0x18] sm:$0xf] %v1297_v5 }
 0x290   : > { %v1446_v24 = vpop.permute.xlu0 %1445 }
 0x291   : > { %v1500_v41 = vsel %vm693_vm4, %v2786_v34, %v1446_v24  ;;  %v1450_v26 = vpop.permute.xlu1 %1449 }
 0x292   : > { %v1501_v27 = vsel %vm695_vm5, %v1500_v41, %v1450_v26 }
 0x294   : > { %v1454_v7 = vpop.permute.xlu0 %1453 }
 0x295   : > { %v1502_v12 = vsel %vm697_vm6, %v1501_v27, %v1454_v7  ;;  %v1458_v2 = vpop.permute.xlu1 %1457 }
 0x296   : > { %v1503_v62 = vsel %vm699_vm7, %v1502_v12, %v1458_v2 }
 0x298   : > { %v1462_v47 = vpop.permute.xlu0 %1461 }
 0x299   : > { %v1504_v1 = vsel %vm701_vm8, %v1503_v62, %v1462_v47  ;;  %v1494_v20 = vpop.permute.xlu1 %1493 }
 0x29a   : > { %v1505_v23 = vsel %vm703_vm9, %v1504_v1, %v1466_v61 }
 0x29c   : > { %v1470_v0 = vpop.permute.xlu0 %1469 }
 0x29d   : > { %v1506_v18 = vsel %vm705_vm10, %v1505_v23, %v1470_v0  ;;  %v1474_v34 = vpop.permute.xlu1 %1473 }
 0x29e   : > { %1514 = vst [vmem:[%s2814_s2] sm:$0xf] %v1506_v18  ;;  %v1507_v6 = vsel %vm693_vm4, %v2829_v45, %v1474_v34 }
 0x29f   : > { %v1508_v22 = vsel %vm695_vm5, %v1507_v6, %v1478_v21 }
 0x2a1   : > { %v1482_v9 = vpop.permute.xlu1 %1481 }
 0x2a2   : > { %v1509_v30 = vsel %vm697_vm6, %v1508_v22, %v1482_v9 }
 0x2a3   : > { %v1510_v14 = vsel %vm699_vm7, %v1509_v30, %v1486_v39 }
 0x2a5   : > { %v1490_v15 = vpop.permute.xlu1 %1489 }
 0x2a6   : > { %v1511_v13 = vsel %vm701_vm8, %v1510_v14, %v1490_v15 }
 0x2a7   : > { %v1512_v28 = vsel %vm703_vm9, %v1511_v13, %v1494_v20 }
 0x2a9   : > { %v1498_v49 = vpop.permute.xlu1 %1497 }
 0x2aa   : > { %v1513_v3 = vsel %vm705_vm10, %v1512_v28, %v1498_v49 }
 0x2ab   : > { %1515 = vst [vmem:[%s2814_s2 + $0x8] sm:$0xf] %v1513_v3 }
 0x2ac PF: > { %p11_p8 = scmp.ge.s32.totalorder %s1767_s11, 4   ;;  %s3027_s6 = smov %s1708_s7 }
 0x2ad   : > { %s3028_s7 = smov %s1712_s8  ;;  %s3029_s8 = smov %s1777_s14 }
 0x2ae   : > { %s3030_s9 = smov %s1767_s11  ;;  %13 = sbr.rel (!%p11_p8) target bundleno = 3 (0x3), region = 64 }
 0x2b5   :  { %1537 = vsyncpa [#allocation5], 1 }
 0x2b6   :  { %1539 = vsyncpa [#allocation5 + $0x1], 1 }

</bundles_post_ra>
